<compile_context>
chip_gen: v7x
topology: tpu7x:2x2x1
jax: 0.10.0
libtpu: 0.0.40
codegen_flags: <defaults>
</compile_context>

<pallas_src>
import functools

import jax
import jax.numpy as jnp
from jax.experimental import pallas as pl
from jax.experimental.pallas import tpu as pltpu


# ----------------------------- Pallas kernel ------------------------------- #
def _conv3x3_s2_kernel(x_ref, w_ref, b_ref, o_ref, *, ho, wo, stride, taps_hw):
    """Fused im2col + GEMM + bias for one batch element.

    x_ref: [Hp, Wp, Cin]      padded NHWC activations (VMEM)
    w_ref: [KH*KW, Cin, Cout] per-tap weight matrices
    b_ref: [1, Cout]          bias
    o_ref: [Ho*Wo, Cout]      output tile (lane-dense Cout)
    """
    kh_taps, kw_taps = taps_hw
    cin = x_ref.shape[-1]
    p, cout = o_ref.shape

    acc = jnp.zeros((p, cout), dtype=jnp.float32)
    for kh in range(kh_taps):            # static 3x3 loop, unrolled at trace time
        for kw in range(kw_taps):
            # Strided in-kernel im2col: [Ho, Wo, Cin] tap, stride 2 in H and W.
            tap = x_ref[pl.ds(kh, ho, stride=stride),
                        pl.ds(kw, wo, stride=stride), :]
            tap2d = tap.reshape(ho * wo, cin)
            w_tap = w_ref[kh * kw_taps + kw]          # [Cin, Cout]
            acc += jnp.dot(tap2d.astype(jnp.float32),
                           w_tap.astype(jnp.float32),
                           preferred_element_type=jnp.float32)

    o_ref[...] = (acc + b_ref[...].astype(jnp.float32)).astype(o_ref.dtype)


def _conv3x3_s2(xp_nhwc, w_taps, bias2d, *, ho, wo, stride):
    """xp_nhwc: [N, Hp, Wp, Cin], w_taps: [9, Cin, Cout], bias2d: [1, Cout]
    -> [N, Ho*Wo, Cout] (f32)."""
    n, hp, wp, cin = xp_nhwc.shape
    kk, _, cout = w_taps.shape
    p = ho * wo

    kernel = functools.partial(
        _conv3x3_s2_kernel, ho=ho, wo=wo, stride=stride, taps_hw=(3, 3)
    )

    return pl.pallas_call(
        kernel,
        out_shape=jax.ShapeDtypeStruct((n, p, cout), jnp.float32),
        grid_spec=pltpu.PrefetchScalarGridSpec(
            num_scalar_prefetch=0,
            grid=(n,),                                   # 2 parallel steps (v7x 2 TCs)
            in_specs=[
                # Padded activations: one batch element per step, batch dim squeezed.
                pl.BlockSpec((pl.Squeezed(), hp, wp, cin),
                             lambda b: (b, 0, 0, 0)),
                # Weights / bias: constant block index -> DMA'd once.
                pl.BlockSpec((kk, cin, cout), lambda b: (0, 0, 0)),
                pl.BlockSpec((1, cout), lambda b: (0, 0)),
            ],
            out_specs=pl.BlockSpec((pl.Squeezed(), p, cout),
                                   lambda b: (b, 0, 0)),
        ),
        compiler_params=pltpu.CompilerParams(
            dimension_semantics=("parallel",),
        ),
    )(xp_nhwc, w_taps, bias2d)


# ------------------------------ Module wrappers ----------------------------- #
def transition3_forward_nhwc(x_nhwc, weight_oihw, bias, *, weight_dtype=jnp.float32):
    """Conv2d(128, 256, k=3, s=2, p=1) on NHWC input; returns NHWC output."""
    n, h, w, cin = x_nhwc.shape
    cout, _, kh, kw = weight_oihw.shape
    stride, pad = 2, 1
    ho = (h + 2 * pad - kh) // stride + 1
    wo = (w + 2 * pad - kw) // stride + 1

    # Zero-pad spatially (small wrapper-side glue; fused with any preceding
    # transpose under jit).  Shape: [N, H+2, W+2, Cin].
    xp = jnp.pad(x_nhwc.astype(jnp.float32),
                 ((0, 0), (pad, pad), (pad, pad), (0, 0)))

    # OIHW -> [KH, KW, Cin, Cout] -> [9, Cin, Cout]; tap order (kh, kw)
    # matches the kernel's static loop order.
    w_taps = jnp.transpose(weight_oihw, (2, 3, 1, 0)).reshape(kh * kw, cin, cout)
    w_taps = w_taps.astype(weight_dtype)
    b2d = bias.reshape(1, cout).astype(jnp.float32)

    out = _conv3x3_s2(xp, w_taps, b2d, ho=ho, wo=wo, stride=stride)  # [N, P, Cout]
    return out.reshape(n, ho, wo, cout)


def transition3_forward(x_nchw, weight_oihw, bias, *, weight_dtype=jnp.float32):
    """PyTorch-layout entry point: NCHW in -> NCHW out."""
    x_nhwc = jnp.transpose(x_nchw, (0, 2, 3, 1))
    out_nhwc = transition3_forward_nhwc(x_nhwc, weight_oihw, bias,
                                        weight_dtype=weight_dtype)
    return jnp.transpose(out_nhwc, (0, 3, 1, 2))


# ---------------------------------- Main ------------------------------------ #
if __name__ == "__main__":
    key = jax.random.PRNGKey(0)
    k_x, k_w, k_b = jax.random.split(key, 3)

    N, Cin, H, W = 2, 128, 16, 16          # Cin fixed to 128 by the module
    Cout, KH, KW = 256, 3, 3

    x = jax.random.normal(k_x, (N, Cin, H, W), dtype=jnp.float32)
    # deterministic kaiming-ish init (fan_in = Cin * KH * KW)
    w = jax.random.normal(k_w, (Cout, Cin, KH, KW), dtype=jnp.float32) * (
        2.0 / (Cin * KH * KW)
    ) ** 0.5
    b = jax.random.normal(k_b, (Cout,), dtype=jnp.float32) * 0.01

    fwd = jax.jit(transition3_forward)
    y = jax.block_until_ready(fwd(x, w, b))
    assert y.shape == (N, Cout, H // 2, W // 2), y.shape

    # Reference check against XLA's conv (same semantics as torch Conv2d).
    y_ref = jax.lax.conv_general_dilated(
        x, w, window_strides=(2, 2), padding=((1, 1), (1, 1)),
        dimension_numbers=("NCHW", "OIHW", "NCHW"),
    ) + b.reshape(1, Cout, 1, 1)
    assert jnp.allclose(y, y_ref, rtol=2e-3, atol=2e-3), float(
        jnp.max(jnp.abs(y - y_ref))
    )

    print("KERNEL_OK")
</pallas_src>

<mosaic_0001>
module attributes {stable_mosaic.version = 11 : i64} {
  func.func @_conv3x3_s2_kernel(%arg0: i32, %arg1: memref<1x18x18x128xf32, #tpu.memory_space<vmem>>, %arg2: memref<9x128x256xf32, #tpu.memory_space<vmem>>, %arg3: memref<1x256xf32, #tpu.memory_space<vmem>>, %arg4: memref<1x64x256xf32, #tpu.memory_space<vmem>>) attributes {dimension_semantics = [#tpu.dimension_semantics<parallel>], iteration_bounds = array<i64: 2>, scalar_prefetch = 0 : i64, scratch_operands = 0 : i64, tpu.core_type = #tpu.core_type<tc>, window_params = [{transform_indices = @transform_0, window_bounds = array<i64: 1, 18, 18, 128>}, {pipeline_mode = #tpu.pipeline_mode<synchronous>, transform_indices = @transform_1, window_bounds = array<i64: 9, 128, 256>}, {pipeline_mode = #tpu.pipeline_mode<synchronous>, transform_indices = @transform_2, window_bounds = array<i64: 1, 256>}, {transform_indices = @transform_3, window_bounds = array<i64: 1, 64, 256>}]} {
    %cst = arith.constant 0.000000e+00 : f32
    %0 = vector.broadcast %cst : f32 to vector<64x256xf32>
    %c0 = arith.constant 0 : index
    %c0_0 = arith.constant 0 : index
    %c0_1 = arith.constant 0 : index
    %c0_2 = arith.constant 0 : index
    %1 = tpu.strided_load %arg1[%c0, %c0_0, %c0_1, %c0_2] {strides = array<i32: 1, 2, 2, 1>} : memref<1x18x18x128xf32, #tpu.memory_space<vmem>>, vector<1x8x8x128xf32>
    %2 = vector.shape_cast %1 : vector<1x8x8x128xf32> to vector<8x8x128xf32>
    %3 = vector.shape_cast %2 : vector<8x8x128xf32> to vector<64x128xf32>
    %c0_3 = arith.constant 0 : index
    %c0_4 = arith.constant 0 : index
    %c0_5 = arith.constant 0 : index
    %4 = vector.load %arg2[%c0_3, %c0_4, %c0_5] : memref<9x128x256xf32, #tpu.memory_space<vmem>>, vector<1x128x256xf32>
    %5 = vector.shape_cast %4 : vector<1x128x256xf32> to vector<128x256xf32>
    %cst_6 = arith.constant dense<0.000000e+00> : vector<64x256xf32>
    %6 = tpu.matmul %3, %5, %cst_6 {dimension_numbers = #tpu.dot_dimension_numbers<[1], [0], [0], [1], [0, 0, 1, 1], [], []>} : vector<64x128xf32>, vector<128x256xf32>, vector<64x256xf32> -> vector<64x256xf32>
    %7 = arith.addf %0, %6 : vector<64x256xf32>
    %c0_7 = arith.constant 0 : index
    %c0_8 = arith.constant 0 : index
    %c1 = arith.constant 1 : index
    %c0_9 = arith.constant 0 : index
    %8 = tpu.strided_load %arg1[%c0_7, %c0_8, %c1, %c0_9] {strides = array<i32: 1, 2, 2, 1>} : memref<1x18x18x128xf32, #tpu.memory_space<vmem>>, vector<1x8x8x128xf32>
    %9 = vector.shape_cast %8 : vector<1x8x8x128xf32> to vector<8x8x128xf32>
    %10 = vector.shape_cast %9 : vector<8x8x128xf32> to vector<64x128xf32>
    %c1_10 = arith.constant 1 : index
    %c0_11 = arith.constant 0 : index
    %c0_12 = arith.constant 0 : index
    %11 = vector.load %arg2[%c1_10, %c0_11, %c0_12] : memref<9x128x256xf32, #tpu.memory_space<vmem>>, vector<1x128x256xf32>
    %12 = vector.shape_cast %11 : vector<1x128x256xf32> to vector<128x256xf32>
    %cst_13 = arith.constant dense<0.000000e+00> : vector<64x256xf32>
    %13 = tpu.matmul %10, %12, %cst_13 {dimension_numbers = #tpu.dot_dimension_numbers<[1], [0], [0], [1], [0, 0, 1, 1], [], []>} : vector<64x128xf32>, vector<128x256xf32>, vector<64x256xf32> -> vector<64x256xf32>
    %14 = arith.addf %7, %13 : vector<64x256xf32>
    %c0_14 = arith.constant 0 : index
    %c0_15 = arith.constant 0 : index
    %c2 = arith.constant 2 : index
    %c0_16 = arith.constant 0 : index
    %15 = tpu.strided_load %arg1[%c0_14, %c0_15, %c2, %c0_16] {strides = array<i32: 1, 2, 2, 1>} : memref<1x18x18x128xf32, #tpu.memory_space<vmem>>, vector<1x8x8x128xf32>
    %16 = vector.shape_cast %15 : vector<1x8x8x128xf32> to vector<8x8x128xf32>
    %17 = vector.shape_cast %16 : vector<8x8x128xf32> to vector<64x128xf32>
    %c2_17 = arith.constant 2 : index
    %c0_18 = arith.constant 0 : index
    %c0_19 = arith.constant 0 : index
    %18 = vector.load %arg2[%c2_17, %c0_18, %c0_19] : memref<9x128x256xf32, #tpu.memory_space<vmem>>, vector<1x128x256xf32>
    %19 = vector.shape_cast %18 : vector<1x128x256xf32> to vector<128x256xf32>
    %cst_20 = arith.constant dense<0.000000e+00> : vector<64x256xf32>
    %20 = tpu.matmul %17, %19, %cst_20 {dimension_numbers = #tpu.dot_dimension_numbers<[1], [0], [0], [1], [0, 0, 1, 1], [], []>} : vector<64x128xf32>, vector<128x256xf32>, vector<64x256xf32> -> vector<64x256xf32>
    %21 = arith.addf %14, %20 : vector<64x256xf32>
    %c0_21 = arith.constant 0 : index
    %c1_22 = arith.constant 1 : index
    %c0_23 = arith.constant 0 : index
    %c0_24 = arith.constant 0 : index
    %22 = tpu.strided_load %arg1[%c0_21, %c1_22, %c0_23, %c0_24] {strides = array<i32: 1, 2, 2, 1>} : memref<1x18x18x128xf32, #tpu.memory_space<vmem>>, vector<1x8x8x128xf32>
    %23 = vector.shape_cast %22 : vector<1x8x8x128xf32> to vector<8x8x128xf32>
    %24 = vector.shape_cast %23 : vector<8x8x128xf32> to vector<64x128xf32>
    %c3 = arith.constant 3 : index
    %c0_25 = arith.constant 0 : index
    %c0_26 = arith.constant 0 : index
    %25 = vector.load %arg2[%c3, %c0_25, %c0_26] : memref<9x128x256xf32, #tpu.memory_space<vmem>>, vector<1x128x256xf32>
    %26 = vector.shape_cast %25 : vector<1x128x256xf32> to vector<128x256xf32>
    %cst_27 = arith.constant dense<0.000000e+00> : vector<64x256xf32>
    %27 = tpu.matmul %24, %26, %cst_27 {dimension_numbers = #tpu.dot_dimension_numbers<[1], [0], [0], [1], [0, 0, 1, 1], [], []>} : vector<64x128xf32>, vector<128x256xf32>, vector<64x256xf32> -> vector<64x256xf32>
    %28 = arith.addf %21, %27 : vector<64x256xf32>
    %c0_28 = arith.constant 0 : index
    %c1_29 = arith.constant 1 : index
    %c1_30 = arith.constant 1 : index
    %c0_31 = arith.constant 0 : index
    %29 = tpu.strided_load %arg1[%c0_28, %c1_29, %c1_30, %c0_31] {strides = array<i32: 1, 2, 2, 1>} : memref<1x18x18x128xf32, #tpu.memory_space<vmem>>, vector<1x8x8x128xf32>
    %30 = vector.shape_cast %29 : vector<1x8x8x128xf32> to vector<8x8x128xf32>
    %31 = vector.shape_cast %30 : vector<8x8x128xf32> to vector<64x128xf32>
    %c4 = arith.constant 4 : index
    %c0_32 = arith.constant 0 : index
    %c0_33 = arith.constant 0 : index
    %32 = vector.load %arg2[%c4, %c0_32, %c0_33] : memref<9x128x256xf32, #tpu.memory_space<vmem>>, vector<1x128x256xf32>
    %33 = vector.shape_cast %32 : vector<1x128x256xf32> to vector<128x256xf32>
    %cst_34 = arith.constant dense<0.000000e+00> : vector<64x256xf32>
    %34 = tpu.matmul %31, %33, %cst_34 {dimension_numbers = #tpu.dot_dimension_numbers<[1], [0], [0], [1], [0, 0, 1, 1], [], []>} : vector<64x128xf32>, vector<128x256xf32>, vector<64x256xf32> -> vector<64x256xf32>
    %35 = arith.addf %28, %34 : vector<64x256xf32>
    %c0_35 = arith.constant 0 : index
    %c1_36 = arith.constant 1 : index
    %c2_37 = arith.constant 2 : index
    %c0_38 = arith.constant 0 : index
    %36 = tpu.strided_load %arg1[%c0_35, %c1_36, %c2_37, %c0_38] {strides = array<i32: 1, 2, 2, 1>} : memref<1x18x18x128xf32, #tpu.memory_space<vmem>>, vector<1x8x8x128xf32>
    %37 = vector.shape_cast %36 : vector<1x8x8x128xf32> to vector<8x8x128xf32>
    %38 = vector.shape_cast %37 : vector<8x8x128xf32> to vector<64x128xf32>
    %c5 = arith.constant 5 : index
    %c0_39 = arith.constant 0 : index
    %c0_40 = arith.constant 0 : index
    %39 = vector.load %arg2[%c5, %c0_39, %c0_40] : memref<9x128x256xf32, #tpu.memory_space<vmem>>, vector<1x128x256xf32>
    %40 = vector.shape_cast %39 : vector<1x128x256xf32> to vector<128x256xf32>
    %cst_41 = arith.constant dense<0.000000e+00> : vector<64x256xf32>
    %41 = tpu.matmul %38, %40, %cst_41 {dimension_numbers = #tpu.dot_dimension_numbers<[1], [0], [0], [1], [0, 0, 1, 1], [], []>} : vector<64x128xf32>, vector<128x256xf32>, vector<64x256xf32> -> vector<64x256xf32>
    %42 = arith.addf %35, %41 : vector<64x256xf32>
    %c0_42 = arith.constant 0 : index
    %c2_43 = arith.constant 2 : index
    %c0_44 = arith.constant 0 : index
    %c0_45 = arith.constant 0 : index
    %43 = tpu.strided_load %arg1[%c0_42, %c2_43, %c0_44, %c0_45] {strides = array<i32: 1, 2, 2, 1>} : memref<1x18x18x128xf32, #tpu.memory_space<vmem>>, vector<1x8x8x128xf32>
    %44 = vector.shape_cast %43 : vector<1x8x8x128xf32> to vector<8x8x128xf32>
    %45 = vector.shape_cast %44 : vector<8x8x128xf32> to vector<64x128xf32>
    %c6 = arith.constant 6 : index
    %c0_46 = arith.constant 0 : index
    %c0_47 = arith.constant 0 : index
    %46 = vector.load %arg2[%c6, %c0_46, %c0_47] : memref<9x128x256xf32, #tpu.memory_space<vmem>>, vector<1x128x256xf32>
    %47 = vector.shape_cast %46 : vector<1x128x256xf32> to vector<128x256xf32>
    %cst_48 = arith.constant dense<0.000000e+00> : vector<64x256xf32>
    %48 = tpu.matmul %45, %47, %cst_48 {dimension_numbers = #tpu.dot_dimension_numbers<[1], [0], [0], [1], [0, 0, 1, 1], [], []>} : vector<64x128xf32>, vector<128x256xf32>, vector<64x256xf32> -> vector<64x256xf32>
    %49 = arith.addf %42, %48 : vector<64x256xf32>
    %c0_49 = arith.constant 0 : index
    %c2_50 = arith.constant 2 : index
    %c1_51 = arith.constant 1 : index
    %c0_52 = arith.constant 0 : index
    %50 = tpu.strided_load %arg1[%c0_49, %c2_50, %c1_51, %c0_52] {strides = array<i32: 1, 2, 2, 1>} : memref<1x18x18x128xf32, #tpu.memory_space<vmem>>, vector<1x8x8x128xf32>
    %51 = vector.shape_cast %50 : vector<1x8x8x128xf32> to vector<8x8x128xf32>
    %52 = vector.shape_cast %51 : vector<8x8x128xf32> to vector<64x128xf32>
    %c7 = arith.constant 7 : index
    %c0_53 = arith.constant 0 : index
    %c0_54 = arith.constant 0 : index
    %53 = vector.load %arg2[%c7, %c0_53, %c0_54] : memref<9x128x256xf32, #tpu.memory_space<vmem>>, vector<1x128x256xf32>
    %54 = vector.shape_cast %53 : vector<1x128x256xf32> to vector<128x256xf32>
    %cst_55 = arith.constant dense<0.000000e+00> : vector<64x256xf32>
    %55 = tpu.matmul %52, %54, %cst_55 {dimension_numbers = #tpu.dot_dimension_numbers<[1], [0], [0], [1], [0, 0, 1, 1], [], []>} : vector<64x128xf32>, vector<128x256xf32>, vector<64x256xf32> -> vector<64x256xf32>
    %56 = arith.addf %49, %55 : vector<64x256xf32>
    %c0_56 = arith.constant 0 : index
    %c2_57 = arith.constant 2 : index
    %c2_58 = arith.constant 2 : index
    %c0_59 = arith.constant 0 : index
    %57 = tpu.strided_load %arg1[%c0_56, %c2_57, %c2_58, %c0_59] {strides = array<i32: 1, 2, 2, 1>} : memref<1x18x18x128xf32, #tpu.memory_space<vmem>>, vector<1x8x8x128xf32>
    %58 = vector.shape_cast %57 : vector<1x8x8x128xf32> to vector<8x8x128xf32>
    %59 = vector.shape_cast %58 : vector<8x8x128xf32> to vector<64x128xf32>
    %c8 = arith.constant 8 : index
    %c0_60 = arith.constant 0 : index
    %c0_61 = arith.constant 0 : index
    %60 = vector.load %arg2[%c8, %c0_60, %c0_61] : memref<9x128x256xf32, #tpu.memory_space<vmem>>, vector<1x128x256xf32>
    %61 = vector.shape_cast %60 : vector<1x128x256xf32> to vector<128x256xf32>
    %cst_62 = arith.constant dense<0.000000e+00> : vector<64x256xf32>
    %62 = tpu.matmul %59, %61, %cst_62 {dimension_numbers = #tpu.dot_dimension_numbers<[1], [0], [0], [1], [0, 0, 1, 1], [], []>} : vector<64x128xf32>, vector<128x256xf32>, vector<64x256xf32> -> vector<64x256xf32>
    %63 = arith.addf %56, %62 : vector<64x256xf32>
    %c0_63 = arith.constant 0 : index
    %c0_64 = arith.constant 0 : index
    %64 = vector.load %arg3[%c0_63, %c0_64] : memref<1x256xf32, #tpu.memory_space<vmem>>, vector<1x256xf32>
    %65 = vector.broadcast %64 : vector<1x256xf32> to vector<64x256xf32>
    %66 = arith.addf %63, %65 : vector<64x256xf32>
    %c0_65 = arith.constant 0 : index
    %c0_66 = arith.constant 0 : index
    %c0_67 = arith.constant 0 : index
    %67 = vector.load %arg4[%c0_65, %c0_66, %c0_67] : memref<1x64x256xf32, #tpu.memory_space<vmem>>, vector<1x64x256xf32>
    %68 = vector.shape_cast %67 : vector<1x64x256xf32> to vector<64x256xf32>
    %69 = vector.shape_cast %66 : vector<64x256xf32> to vector<1x64x256xf32>
    tpu.vector_store %arg4[%c0_65, %c0_66, %c0_67], %69 {strides = array<i32>} : memref<1x64x256xf32, #tpu.memory_space<vmem>>, vector<1x64x256xf32>,
    return
  }
  func.func @transform_0(%arg0: i32) -> (i32, i32, i32, i32) {
    %c0_i32 = arith.constant 0 : i32
    %c0_i32_0 = arith.constant 0 : i32
    %c0_i32_1 = arith.constant 0 : i32
    %c0_i32_2 = arith.constant 0 : i32
    return %arg0, %c0_i32, %c0_i32_0, %c0_i32_1 : i32, i32, i32, i32
  }
  func.func @transform_1(%arg0: i32) -> (i32, i32, i32) {
    %c0_i32 = arith.constant 0 : i32
    %c0_i32_0 = arith.constant 0 : i32
    %c0_i32_1 = arith.constant 0 : i32
    %c0_i32_2 = arith.constant 0 : i32
    return %c0_i32, %c0_i32_0, %c0_i32_1 : i32, i32, i32
  }
  func.func @transform_2(%arg0: i32) -> (i32, i32) {
    %c0_i32 = arith.constant 0 : i32
    %c0_i32_0 = arith.constant 0 : i32
    %c0_i32_1 = arith.constant 0 : i32
    return %c0_i32, %c0_i32_0 : i32, i32
  }
  func.func @transform_3(%arg0: i32) -> (i32, i32, i32) {
    %c0_i32 = arith.constant 0 : i32
    %c0_i32_0 = arith.constant 0 : i32
    %c0_i32_1 = arith.constant 0 : i32
    return %arg0, %c0_i32, %c0_i32_0 : i32, i32, i32
  }
}

</mosaic_0001>

<bundles_post_ra>
// kernel: transition3_forward.1
= control target key start
LH: loop header
LB: loop body
LE: loop exit
PB: predicated region body
PF: predicated region fallthrough
CT: control target
= control target key end

     0   :  { %8 = vsyncpa [#allocation3], 0  ;;  %s3974_s0 = inlined_call_operand.vmem [shape: f32[2,18,18,128], index: 0, kind: input, shape index: {}]   ;;  %s3975_s1 = inlined_call_operand.vmem [shape: f32[9,128,256], index: 1, kind: input, shape index: {}]   ;;  %s3976_s2 = inlined_call_operand.vmem [shape: f32[1,256], index: 2, kind: input, shape index: {}]   ;;  %s3977_s3 = inlined_call_operand.hbm [shape: f32[2,64,256], index: 3, kind: output, shape index: {}]  }
   0x1   :  { %10 = vsyncpa [#allocation3 + $0x1], 0  ;;  %s2805_s12 = smov 0   ;;  %s2807_s13 = smov 0  }
   0x2   :  { %s2809_s14 = smov 0   ;;  %s2811_s15 = smov 0  }
   0x3 LB: > { %s2826_s16 = sadd.s32 4294967295, %s2779_s15   ;;  %s1903_s17 = sadd.s32 4294967294, %s2779_s15   ;;  %s2779_s15 = sphi %s2811_s15, %s3983_s15   ;;  %s2775_s14 = sphi %s2809_s14, %s3982_s14   ;;  %s2771_s13 = sphi %s2807_s13, %s3981_s13   ;;  %s2767_s12 = sphi %s2805_s12, %s3980_s12  }
   0x4   : > { %s2830_s18 = sadd.s32 1, %s2779_s15   ;;  %s91_s19 = sadd.s32 1, %s2775_s14 }
   0x5   : > { %s88_s20 = ssub.s32 %s2779_s15, %s2830_s18  ;;  %p101_p0 = scmp.ne.s32.totalorder %s2775_s14, %s2771_s13 }
   0x6   : > { %p89_p1 = scmp.eq.s32.totalorder %s88_s20, 0  ;;  %p102_p2 = scmp.eq.s32.totalorder %s2826_s16, 1 }
   0x7   : > { %p107_p3 = scmp.ne.s32.totalorder %s2771_s13, %s2767_s12  ;;  %p108_p4 = scmp.eq.s32.totalorder %s1903_s17, 1 }
   0x8   : > { %s2841_s21 = scalar_select %p89_p1, %s2775_s14, %s91_s19  }
   0x9   : > { %p2843_p5 = por %p102_p2, %p101_p0  ;;  %p2847_p6 = por %p108_p4, %p107_p3 }
   0xa   : > { %p1906_p7 = scmp.ge.s32.totalorder %s2779_s15, 1  ;;  %p140_p8 = scmp.lt.s32.totalorder %s2779_s15, 3 }
   0xc   : > { %p141_p9 = pnand %p1906_p7, %p140_p8 }
   0xd   : > { %v1925_v0 = vld [vmem:[%s3975_s1 + $0x108] sm:$0xff] (!%p141_p9)  ;;  %v1927_v1 = vld [vmem:[%s3975_s1 + $0x118] sm:$0xff] (!%p141_p9)  ;;  %v1924_v5 = vld [vmem:[%s3975_s1 + $0x100] sm:$0xff] (!%p141_p9)  ;;  %v2781_v7 = vmov (!%p141_p9), 0.0   ;;  %p164_p10 = scmp.lt.s32.totalorder (!%p141_p9), %s2826_s16, 1  ;;  %s2241_s20 = sshll.u32 (!%p141_p9), %s2826_s16, 11 }
   0xe   : > { %144 = sbr.rel (%p141_p9) target bundleno = 421 (0x1a5), region = 32  ;;  %v2045_v2 = vld [vmem:[%s3975_s1 + $0x408] sm:$0xff] (!%p141_p9)  ;;  %v2242_v3 = vpack.c.bf16 (!%p141_p9), %v1927_v1, %v1925_v0  ;;  %v2047_v4 = vld [vmem:[%s3975_s1 + $0x418] sm:$0xff] (!%p141_p9)  ;;  %v1926_v6 = vld [vmem:[%s3975_s1 + $0x110] sm:$0xff] (!%p141_p9)  ;;  %329 = vmatprep.mubr.f32.mxu1 (!%p141_p9), %v2781_v7  ;;  %960 = vmatprep.mubr.f32.mxu0 (!%p141_p9), %v2781_v7  ;;  %s3922_s28 = scalar_lea.hbm (!%p141_p9), %s3977_s3, %s2241_s20 }
   0xf   : > { %v2370_v8 = vpack.c.bf16 (!%p141_p9), %v2047_v4, %v2045_v2  ;;  %v2244_v9 = vpack.c.bf16 (!%p141_p9), %v1926_v6, %v1924_v5  ;;  %v2044_v10 = vld [vmem:[%s3975_s1 + $0x400] sm:$0xff] (!%p141_p9)  ;;  %v2046_v11 = vld [vmem:[%s3975_s1 + $0x410] sm:$0xff] (!%p141_p9)  ;;  %v1929_v12 = vld [vmem:[%s3975_s1 + $0x128] sm:$0xff] (!%p141_p9)  ;;  %s2782_s30 = smov (!%p141_p9), [#allocation2]  }
  0x10   : > { %2243 = vmatprep.subr.bf16.mxu1 (!%p141_p9), %v2242_v3  ;;  %v2372_v13 = vpack.c.bf16 (!%p141_p9), %v2046_v11, %v2044_v10  ;;  %v1931_v14 = vld [vmem:[%s3975_s1 + $0x138] sm:$0xff] (!%p141_p9)  ;;  %v2049_v15 = vld [vmem:[%s3975_s1 + $0x428] sm:$0xff] (!%p141_p9)  ;;  %v1928_v19 = vld [vmem:[%s3975_s1 + $0x120] sm:$0xff] (!%p141_p9)  ;;  %s2721_s4 = sshll.u32 (!%p141_p9), %s2782_s30, 4  ;;  %s2722_s4 = int_to_ptr.vmem [resolvable:$false] %s2721_s4 }
  0x11   : > { %v2051_v16 = vld [vmem:[%s3975_s1 + $0x438] sm:$0xff] (!%p141_p9)  ;;  %2371 = vmatprep.subr.bf16.mxu0 (!%p141_p9), %v2370_v8  ;;  %2245 = vmatpush1.bf16.msra.mxu1 (!%p141_p9), %v2244_v9  ;;  %v2246_v17 = vpack.c.bf16 (!%p141_p9), %v1931_v14, %v1929_v12  ;;  %v1930_v20 = vld [vmem:[%s3975_s1 + $0x130] sm:$0xff] (!%p141_p9)  ;;  %v2048_v21 = vld [vmem:[%s3975_s1 + $0x420] sm:$0xff] (!%p141_p9)  ;;  %s2723_s5 = scalar_lea.vmem (!%p141_p9), %s2722_s4, 4096 }
  0x12   : > { %v2374_v18 = vpack.c.bf16 (!%p141_p9), %v2051_v16, %v2049_v15  ;;  %2373 = vmatpush1.bf16.msra.mxu0 (!%p141_p9), %v2372_v13  ;;  %v2248_v22 = vpack.c.bf16 (!%p141_p9), %v1930_v20, %v1928_v19  ;;  %v2050_v23 = vld [vmem:[%s3975_s1 + $0x430] sm:$0xff] (!%p141_p9)  ;;  %v1933_v24 = vld [vmem:[%s3975_s1 + $0x148] sm:$0xff] (!%p141_p9)  ;;  %v1935_v25 = vld [vmem:[%s3975_s1 + $0x158] sm:$0xff] (!%p141_p9) }
  0x13   : > { %2247 = vmatprep.subr.bf16.mxu1 (!%p141_p9), %v2246_v17  ;;  %v2376_v26 = vpack.c.bf16 (!%p141_p9), %v2050_v23, %v2048_v21  ;;  %v2250_v27 = vpack.c.bf16 (!%p141_p9), %v1935_v25, %v1933_v24  ;;  %v2053_v28 = vld [vmem:[%s3975_s1 + $0x448] sm:$0xff] (!%p141_p9)  ;;  %v2055_v29 = vld [vmem:[%s3975_s1 + $0x458] sm:$0xff] (!%p141_p9)  ;;  %v1932_v30 = vld [vmem:[%s3975_s1 + $0x140] sm:$0xff] (!%p141_p9) }
  0x14   : > { %2375 = vmatprep.subr.bf16.mxu0 (!%p141_p9), %v2374_v18  ;;  %v2378_v31 = vpack.c.bf16 (!%p141_p9), %v2055_v29, %v2053_v28  ;;  %v1934_v32 = vld [vmem:[%s3975_s1 + $0x150] sm:$0xff] (!%p141_p9)  ;;  %v2052_v33 = vld [vmem:[%s3975_s1 + $0x440] sm:$0xff] (!%p141_p9)  ;;  %v1937_v36 = vld [vmem:[%s3975_s1 + $0x168] sm:$0xff] (!%p141_p9) }
  0x15   : > { %v2054_v34 = vld [vmem:[%s3975_s1 + $0x450] sm:$0xff]  ;;  %2249 = vmatpush1.bf16.msra.mxu1 %v2248_v22  ;;  %v2252_v35 = vpack.c.bf16 %v1934_v32, %v1932_v30  ;;  %v1939_v37 = vld [vmem:[%s3975_s1 + $0x178] sm:$0xff]  ;;  %v2057_v38 = vld [vmem:[%s3975_s1 + $0x468] sm:$0xff]  ;;  %s3024_s26 = scalar_select %p164_p10, %s2826_s16, 1 }
  0x16   : > { %2377 = vmatpush1.bf16.msra.mxu0 %v2376_v26  ;;  %2251 = vmatprep.subr.bf16.mxu1 %v2250_v27  ;;  %v2380_v39 = vpack.c.bf16 %v2054_v34, %v2052_v33  ;;  %v2254_v40 = vpack.c.bf16 %v1939_v37, %v1937_v36  ;;  %v2059_v41 = vld [vmem:[%s3975_s1 + $0x478] sm:$0xff]  ;;  %v1936_v42 = vld [vmem:[%s3975_s1 + $0x160] sm:$0xff]  ;;  %v1938_v43 = vld [vmem:[%s3975_s1 + $0x170] sm:$0xff] }
  0x17   : > { %2379 = vmatprep.subr.bf16.mxu0 %v2378_v31  ;;  %v2382_v44 = vpack.c.bf16 %v2059_v41, %v2057_v38  ;;  %v2056_v45 = vld [vmem:[%s3975_s1 + $0x460] sm:$0xff]  ;;  %v2058_v46 = vld [vmem:[%s3975_s1 + $0x470] sm:$0xff]  ;;  %v1941_v47 = vld [vmem:[%s3975_s1 + $0x188] sm:$0xff]  ;;  %v2256_v51 = vpack.c.bf16 %v1938_v43, %v1936_v42  ;;  %s2674_s25 = smul.u32 432, %s3024_s26 }
  0x18   : > { %v1943_v48 = vld [vmem:[%s3975_s1 + $0x198] sm:$0xff]  ;;  %v2061_v49 = vld [vmem:[%s3975_s1 + $0x488] sm:$0xff]  ;;  %v2384_v52 = vpack.c.bf16 %v2058_v46, %v2056_v45  ;;  %v1940_v54 = vld [vmem:[%s3975_s1 + $0x180] sm:$0xff] }
  0x19   : > { %v2063_v50 = vld [vmem:[%s3975_s1 + $0x498] sm:$0xff]  ;;  %2253 = vmatpush1.bf16.msra.mxu1 %v2252_v35  ;;  %v2258_v53 = vpack.c.bf16 %v1943_v48, %v1941_v47  ;;  %v1942_v55 = vld [vmem:[%s3975_s1 + $0x190] sm:$0xff]  ;;  %v2060_v56 = vld [vmem:[%s3975_s1 + $0x480] sm:$0xff]  ;;  %s3069_s11 = scalar_lea.vmem %s3974_s0, %s2674_s25 }
  0x1a   : > { %2381 = vmatpush1.bf16.msra.mxu0 %v2380_v39  ;;  %2255 = vmatprep.subr.bf16.mxu1 %v2254_v40  ;;  %v2386_v57 = vpack.c.bf16 %v2063_v50, %v2061_v49  ;;  %v2062_v58 = vld [vmem:[%s3975_s1 + $0x490] sm:$0xff]  ;;  %v1945_v59 = vld [vmem:[%s3975_s1 + $0x1a8] sm:$0xff]  ;;  %v1947_v60 = vld [vmem:[%s3975_s1 + $0x1b8] sm:$0xff]  ;;  %v2260_v63 = vpack.c.bf16 %v1942_v55, %v1940_v54 }
  0x1b   : > { %2383 = vmatprep.subr.bf16.mxu0 %v2382_v44  ;;  %v2065_v61 = vld [vmem:[%s3975_s1 + $0x4a8] sm:$0xff]  ;;  %v2067_v62 = vld [vmem:[%s3975_s1 + $0x4b8] sm:$0xff]  ;;  %v2388_v0 = vpack.c.bf16 %v2062_v58, %v2060_v56  ;;  %v2262_v1 = vpack.c.bf16 %v1947_v60, %v1945_v59  ;;  %v1944_v2 = vld [vmem:[%s3975_s1 + $0x1a0] sm:$0xff] }
  0x1c   : > { %v1946_v3 = vld [vmem:[%s3975_s1 + $0x1b0] sm:$0xff]  ;;  %v2064_v4 = vld [vmem:[%s3975_s1 + $0x4a0] sm:$0xff]  ;;  %v2390_v5 = vpack.c.bf16 %v2067_v62, %v2065_v61  ;;  %v1949_v8 = vld [vmem:[%s3975_s1 + $0x1c8] sm:$0xff] }
  0x1d   : > { %2257 = vmatpush1.bf16.msra.mxu1 %v2256_v51  ;;  %v2066_v6 = vld [vmem:[%s3975_s1 + $0x4b0] sm:$0xff]  ;;  %v1951_v9 = vld [vmem:[%s3975_s1 + $0x1d8] sm:$0xff]  ;;  %v2069_v10 = vld [vmem:[%s3975_s1 + $0x4c8] sm:$0xff]  ;;  %v2264_v12 = vpack.c.bf16 %v1946_v3, %v1944_v2 }
  0x1e   : > { %2385 = vmatpush1.bf16.msra.mxu0 %v2384_v52  ;;  %2259 = vmatprep.subr.bf16.mxu1 %v2258_v53  ;;  %v2071_v11 = vld [vmem:[%s3975_s1 + $0x4d8] sm:$0xff]  ;;  %v2392_v13 = vpack.c.bf16 %v2066_v6, %v2064_v4  ;;  %v2266_v14 = vpack.c.bf16 %v1951_v9, %v1949_v8  ;;  %v1948_v15 = vld [vmem:[%s3975_s1 + $0x1c0] sm:$0xff]  ;;  %v1950_v16 = vld [vmem:[%s3975_s1 + $0x1d0] sm:$0xff] }
  0x1f   : > { %2387 = vmatprep.subr.bf16.mxu0 %v2386_v57  ;;  %v2068_v17 = vld [vmem:[%s3975_s1 + $0x4c0] sm:$0xff]  ;;  %v2394_v18 = vpack.c.bf16 %v2071_v11, %v2069_v10  ;;  %v2070_v19 = vld [vmem:[%s3975_s1 + $0x4d0] sm:$0xff]  ;;  %v1953_v20 = vld [vmem:[%s3975_s1 + $0x1e8] sm:$0xff]  ;;  %v2268_v24 = vpack.c.bf16 %v1950_v16, %v1948_v15 }
  0x20   : > { %v1955_v21 = vld [vmem:[%s3975_s1 + $0x1f8] sm:$0xff]  ;;  %v2073_v22 = vld [vmem:[%s3975_s1 + $0x4e8] sm:$0xff]  ;;  %v2396_v25 = vpack.c.bf16 %v2070_v19, %v2068_v17  ;;  %v1952_v27 = vld [vmem:[%s3975_s1 + $0x1e0] sm:$0xff] }
  0x21   : > { %2261 = vmatpush1.bf16.msra.mxu1 %v2260_v63  ;;  %v2075_v23 = vld [vmem:[%s3975_s1 + $0x4f8] sm:$0xff]  ;;  %v2270_v26 = vpack.c.bf16 %v1955_v21, %v1953_v20  ;;  %v1954_v28 = vld [vmem:[%s3975_s1 + $0x1f0] sm:$0xff]  ;;  %v2072_v29 = vld [vmem:[%s3975_s1 + $0x4e0] sm:$0xff] }
  0x22   : > { %2389 = vmatpush1.bf16.msra.mxu0 %v2388_v0  ;;  %2263 = vmatprep.subr.bf16.mxu1 %v2262_v1  ;;  %v2398_v30 = vpack.c.bf16 %v2075_v23, %v2073_v22  ;;  %v2074_v31 = vld [vmem:[%s3975_s1 + $0x4f0] sm:$0xff]  ;;  %v185_v32 = vld [vmem:[%s3975_s1 + $0x8] sm:$0xff]  ;;  %v187_v33 = vld [vmem:[%s3975_s1 + $0x18] sm:$0xff]  ;;  %v2272_v36 = vpack.c.bf16 %v1954_v28, %v1952_v27 }
  0x23   : > { %2391 = vmatprep.subr.bf16.mxu0 %v2390_v5  ;;  %v2085_v34 = vld [vmem:[%s3975_s1 + $0x508] sm:$0xff]  ;;  %v2087_v35 = vld [vmem:[%s3975_s1 + $0x518] sm:$0xff]  ;;  %v2400_v37 = vpack.c.bf16 %v2074_v31, %v2072_v29  ;;  %v2274_v38 = vpack.c.bf16 %v187_v33, %v185_v32  ;;  %v184_v39 = vld [vmem:[%s3975_s1] sm:$0xff] }
  0x24   : > { %v186_v40 = vld [vmem:[%s3975_s1 + $0x10] sm:$0xff]  ;;  %v2402_v41 = vpack.c.bf16 %v2087_v35, %v2085_v34  ;;  %v2084_v42 = vld [vmem:[%s3975_s1 + $0x500] sm:$0xff]  ;;  %v189_v44 = vld [vmem:[%s3975_s1 + $0x28] sm:$0xff] }
  0x25   : > { %2265 = vmatpush1.bf16.msra.mxu1 %v2264_v12  ;;  %v2086_v43 = vld [vmem:[%s3975_s1 + $0x510] sm:$0xff]  ;;  %v191_v45 = vld [vmem:[%s3975_s1 + $0x38] sm:$0xff]  ;;  %v1916_v46 = vld [vmem:[%s3069_s11 + $0x1] ss:$2 sm:$0xff]  ;;  %v2276_v47 = vpack.c.bf16 %v186_v40, %v184_v39 }
  0x26   : > { %2393 = vmatpush1.bf16.msra.mxu0 %v2392_v13  ;;  %2267 = vmatprep.subr.bf16.mxu1 %v2266_v14  ;;  %v2089_v48 = vld [vmem:[%s3975_s1 + $0x528] sm:$0xff]  ;;  %v2091_v49 = vld [vmem:[%s3975_s1 + $0x538] sm:$0xff]  ;;  %v2404_v51 = vpack.c.bf16 %v2086_v43, %v2084_v42  ;;  %v188_v52 = vld [vmem:[%s3975_s1 + $0x20] sm:$0xff]  ;;  %v2278_v54 = vpack.c.bf16 %v191_v45, %v189_v44 }
  0x27   : > { %2395 = vmatprep.subr.bf16.mxu0 %v2394_v18  ;;  %v2036_v50 = vld [vmem:[%s3069_s11 + $0x19] ss:$2 sm:$0xff]  ;;  %v190_v53 = vld [vmem:[%s3975_s1 + $0x30] sm:$0xff]  ;;  %v2406_v57 = vpack.c.bf16 %v2091_v49, %v2089_v48  ;;  %v193_v58 = vld [vmem:[%s3975_s1 + $0x48] sm:$0xff] }
  0x28   : > { %v2088_v55 = vld [vmem:[%s3975_s1 + $0x520] sm:$0xff]  ;;  %v2090_v56 = vld [vmem:[%s3975_s1 + $0x530] sm:$0xff]  ;;  %v195_v59 = vld [vmem:[%s3975_s1 + $0x58] sm:$0xff]  ;;  %v2280_v61 = vpack.c.bf16 %v190_v53, %v188_v52 }
  0x29   : > { %2269 = vmatpush1.bf16.msra.mxu1 %v2268_v24  ;;  %v1917_v60 = vld [vmem:[%s3069_s11 + $0x31] ss:$2 sm:$0xff]  ;;  %v2093_v62 = vld [vmem:[%s3975_s1 + $0x548] sm:$0xff]  ;;  %v2408_v1 = vpack.c.bf16 %v2090_v56, %v2088_v55  ;;  %v192_v2 = vld [vmem:[%s3975_s1 + $0x40] sm:$0xff]  ;;  %v2282_v4 = vpack.c.bf16 %v195_v59, %v193_v58 }
  0x2a   : > { %2397 = vmatpush1.bf16.msra.mxu0 %v2396_v25  ;;  %2271 = vmatprep.subr.bf16.mxu1 %v2270_v26  ;;  %v2095_v63 = vld [vmem:[%s3975_s1 + $0x558] sm:$0xff]  ;;  %v2037_v0 = vld [vmem:[%s3069_s11 + $0x49] ss:$2 sm:$0xff]  ;;  %v2092_v5 = vld [vmem:[%s3975_s1 + $0x540] sm:$0xff] }
  0x2b   : > { %2399 = vmatprep.subr.bf16.mxu0 %v2398_v30  ;;  %v194_v3 = vld [vmem:[%s3975_s1 + $0x50] sm:$0xff]  ;;  %v2410_v8 = vpack.c.bf16 %v2095_v63, %v2093_v62  ;;  %v197_v9 = vld [vmem:[%s3975_s1 + $0x68] sm:$0xff]  ;;  %v199_v10 = vld [vmem:[%s3975_s1 + $0x78] sm:$0xff] }
  0x2c   : > { %v2094_v6 = vld [vmem:[%s3975_s1 + $0x550] sm:$0xff]  ;;  %v1918_v11 = vld [vmem:[%s3069_s11 + $0x61] ss:$2 sm:$0xff]  ;;  %v2284_v12 = vpack.c.bf16 %v194_v3, %v192_v2  ;;  %v2099_v14 = vld [vmem:[%s3975_s1 + $0x578] sm:$0xff]  ;;  %v2286_v19 = vpack.c.bf16 %v199_v10, %v197_v9 }
  0x2d   : > { %2273 = vmatpush1.bf16.msra.mxu1 %v2272_v36  ;;  %v2097_v13 = vld [vmem:[%s3975_s1 + $0x568] sm:$0xff]  ;;  %v2038_v15 = vld [vmem:[%s3069_s11 + $0x79] ss:$2 sm:$0xff]  ;;  %v2412_v16 = vpack.c.bf16 %v2094_v6, %v2092_v5  ;;  %v198_v18 = vld [vmem:[%s3975_s1 + $0x70] sm:$0xff] }
  0x2e   : > { %2401 = vmatpush1.bf16.msra.mxu0 %v2400_v37  ;;  %2275 = vmatprep.subr.bf16.mxu1 %v2274_v38  ;;  %v196_v17 = vld [vmem:[%s3975_s1 + $0x60] sm:$0xff]  ;;  %v2098_v21 = vld [vmem:[%s3975_s1 + $0x570] sm:$0xff]  ;;  %v2414_v22 = vpack.c.bf16 %v2099_v14, %v2097_v13  ;;  %v201_v23 = vld [vmem:[%s3975_s1 + $0x88] sm:$0xff] }
  0x2f   : > { %2403 = vmatprep.subr.bf16.mxu0 %v2402_v41  ;;  %v2096_v20 = vld [vmem:[%s3975_s1 + $0x560] sm:$0xff]  ;;  %v203_v24 = vld [vmem:[%s3975_s1 + $0x98] sm:$0xff]  ;;  %v2288_v26 = vpack.c.bf16 %v198_v18, %v196_v17  ;;  %v2101_v27 = vld [vmem:[%s3975_s1 + $0x588] sm:$0xff] }
  0x30   : > { %330 = vmatmul.mubr.f32.vlgmr.msra.gmra.mrb[0].mxu1 %v1916_v46  ;;  %v1919_v25 = vld [vmem:[%s3069_s11 + $0x91] ss:$2 sm:$0xff]  ;;  %v2416_v30 = vpack.c.bf16 %v2098_v21, %v2096_v20  ;;  %v200_v31 = vld [vmem:[%s3975_s1 + $0x80] sm:$0xff]  ;;  %v2290_v33 = vpack.c.bf16 %v203_v24, %v201_v23  ;;  %v205_v37 = vld [vmem:[%s3975_s1 + $0xa8] sm:$0xff] }
  0x31   : > { %961 = vmatmul.mubr.f32.vlgmr.msra.gmra.mrb[0].mxu0 %v2036_v50  ;;  %2277 = vmatpush1.bf16.msra.mxu1 %v2276_v47  ;;  %v2103_v28 = vld [vmem:[%s3975_s1 + $0x598] sm:$0xff]  ;;  %v2039_v29 = vld [vmem:[%s3069_s11 + $0xa9] ss:$2 sm:$0xff]  ;;  %v2100_v34 = vld [vmem:[%s3975_s1 + $0x580] sm:$0xff] }
  0x32   : > { %2405 = vmatpush1.bf16.msra.mxu0 %v2404_v51  ;;  %335 = vmatprep.mubr.f32.mxu1 %v2781_v7  ;;  %v202_v32 = vld [vmem:[%s3975_s1 + $0x90] sm:$0xff]  ;;  %v2418_v36 = vpack.c.bf16 %v2103_v28, %v2101_v27  ;;  %v207_v38 = vld [vmem:[%s3975_s1 + $0xb8] sm:$0xff]  ;;  %v1920_v39 = vld [vmem:[%s3069_s11 + $0xc1] ss:$2 sm:$0xff] }
  0x33   : > { %966 = vmatprep.mubr.f32.mxu0 %v2781_v7  ;;  %2279 = vmatprep.subr.bf16.mxu1 %v2278_v54  ;;  %v2102_v35 = vld [vmem:[%s3975_s1 + $0x590] sm:$0xff]  ;;  %v2292_v40 = vpack.c.bf16 %v202_v32, %v200_v31  ;;  %v2105_v41 = vld [vmem:[%s3975_s1 + $0x5a8] sm:$0xff]  ;;  %v2107_v42 = vld [vmem:[%s3975_s1 + $0x5b8] sm:$0xff]  ;;  %v2294_v47 = vpack.c.bf16 %v207_v38, %v205_v37 }
  0x34   : > { %336 = vmatmul.mubr.f32.gmra.mrb[2].mxu1 %v1917_v60  ;;  %2407 = vmatprep.subr.bf16.mxu0 %v2406_v57  ;;  %v2040_v43 = vld [vmem:[%s3069_s11 + $0xd9] ss:$2 sm:$0xff]  ;;  %v2420_v44 = vpack.c.bf16 %v2102_v35, %v2100_v34  ;;  %v206_v46 = vld [vmem:[%s3975_s1 + $0xb0] sm:$0xff]  ;;  %v2422_v50 = vpack.c.bf16 %v2107_v42, %v2105_v41  ;;  %v209_v51 = vld [vmem:[%s3975_s1 + $0xc8] sm:$0xff] }
  0x35   : > { %967 = vmatmul.mubr.f32.gmra.mrb[2].mxu0 %v2037_v0  ;;  %2281 = vmatpush1.bf16.msra.mxu1 %v2280_v61  ;;  %v204_v45 = vld [vmem:[%s3975_s1 + $0xa0] sm:$0xff]  ;;  %v2106_v49 = vld [vmem:[%s3975_s1 + $0x5b0] sm:$0xff]  ;;  %v211_v52 = vld [vmem:[%s3975_s1 + $0xd8] sm:$0xff] }
  0x36   : > { %2409 = vmatpush1.bf16.msra.mxu0 %v2408_v1  ;;  %341 = vmatprep.mubr.f32.mxu1 %v2781_v7  ;;  %v2104_v48 = vld [vmem:[%s3975_s1 + $0x5a0] sm:$0xff]  ;;  %v1921_v53 = vld [vmem:[%s3069_s11 + $0xf1] ss:$2 sm:$0xff]  ;;  %v2296_v54 = vpack.c.bf16 %v206_v46, %v204_v45  ;;  %v2109_v55 = vld [vmem:[%s3975_s1 + $0x5c8] sm:$0xff]  ;;  %v2298_v61 = vpack.c.bf16 %v211_v52, %v209_v51 }
  0x37   : > { %972 = vmatprep.mubr.f32.mxu0 %v2781_v7  ;;  %2283 = vmatprep.subr.bf16.mxu1 %v2282_v4  ;;  %v2111_v56 = vld [vmem:[%s3975_s1 + $0x5d8] sm:$0xff]  ;;  %v2041_v57 = vld [vmem:[%s3069_s11 + $0x109] ss:$2 sm:$0xff]  ;;  %v2424_v58 = vpack.c.bf16 %v2106_v49, %v2104_v48  ;;  %v208_v59 = vld [vmem:[%s3975_s1 + $0xc0] sm:$0xff] }
  0x38   : > { %342 = vmatmul.mubr.f32.gmra.mrb[4].mxu1 %v1918_v11  ;;  %2411 = vmatprep.subr.bf16.mxu0 %v2410_v8  ;;  %v210_v60 = vld [vmem:[%s3975_s1 + $0xd0] sm:$0xff]  ;;  %v2108_v62 = vld [vmem:[%s3975_s1 + $0x5c0] sm:$0xff]  ;;  %v2426_v0 = vpack.c.bf16 %v2111_v56, %v2109_v55  ;;  %v213_v1 = vld [vmem:[%s3975_s1 + $0xe8] sm:$0xff] }
  0x39   : > { %973 = vmatmul.mubr.f32.gmra.mrb[4].mxu0 %v2038_v15  ;;  %2285 = vmatpush1.bf16.msra.mxu1 %v2284_v12  ;;  %v2110_v63 = vld [vmem:[%s3975_s1 + $0x5d0] sm:$0xff]  ;;  %v215_v2 = vld [vmem:[%s3975_s1 + $0xf8] sm:$0xff]  ;;  %v1922_v3 = vld [vmem:[%s3069_s11 + $0x121] ss:$2 sm:$0xff]  ;;  %v2300_v4 = vpack.c.bf16 %v210_v60, %v208_v59 }
  0x3a   : > { %2413 = vmatpush1.bf16.msra.mxu0 %v2412_v16  ;;  %347 = vmatprep.mubr.f32.mxu1 %v2781_v7  ;;  %v2113_v5 = vld [vmem:[%s3975_s1 + $0x5e8] sm:$0xff]  ;;  %v2115_v6 = vld [vmem:[%s3975_s1 + $0x5f8] sm:$0xff]  ;;  %v2428_v9 = vpack.c.bf16 %v2110_v63, %v2108_v62  ;;  %v212_v10 = vld [vmem:[%s3975_s1 + $0xe0] sm:$0xff]  ;;  %v2302_v12 = vpack.c.bf16 %v215_v2, %v213_v1 }
  0x3b   : > { %978 = vmatprep.mubr.f32.mxu0 %v2781_v7  ;;  %2287 = vmatprep.subr.bf16.mxu1 %v2286_v19  ;;  %v2042_v8 = vld [vmem:[%s3069_s11 + $0x139] ss:$2 sm:$0xff]  ;;  %v214_v11 = vld [vmem:[%s3975_s1 + $0xf0] sm:$0xff]  ;;  %v2430_v15 = vpack.c.bf16 %v2115_v6, %v2113_v5  ;;  %v1965_v16 = vld [vmem:[%s3975_s1 + $0x208] sm:$0xff] }
  0x3c   : > { %348 = vmatmul.mubr.f32.gmra.mrb[6].mxu1 %v1919_v25  ;;  %2415 = vmatprep.subr.bf16.mxu0 %v2414_v22  ;;  %v2112_v13 = vld [vmem:[%s3975_s1 + $0x5e0] sm:$0xff]  ;;  %v2114_v14 = vld [vmem:[%s3975_s1 + $0x5f0] sm:$0xff]  ;;  %v1967_v17 = vld [vmem:[%s3975_s1 + $0x218] sm:$0xff]  ;;  %v2304_v19 = vpack.c.bf16 %v214_v11, %v212_v10 }
  0x3d   : > { %979 = vmatmul.mubr.f32.gmra.mrb[6].mxu0 %v2039_v29  ;;  %2289 = vmatpush1.bf16.msra.mxu1 %v2288_v26  ;;  %v1923_v18 = vld [vmem:[%s3069_s11 + $0x151] ss:$2 sm:$0xff]  ;;  %v2125_v20 = vld [vmem:[%s3975_s1 + $0x608] sm:$0xff]  ;;  %v2432_v23 = vpack.c.bf16 %v2114_v14, %v2112_v13  ;;  %v1964_v24 = vld [vmem:[%s3975_s1 + $0x200] sm:$0xff]  ;;  %v2306_v26 = vpack.c.bf16 %v1967_v17, %v1965_v16 }
  0x3e   : > { %2417 = vmatpush1.bf16.msra.mxu0 %v2416_v30  ;;  %353 = vmatprep.mubr.f32.mxu1 %v2781_v7  ;;  %v2127_v21 = vld [vmem:[%s3975_s1 + $0x618] sm:$0xff]  ;;  %v2043_v22 = vld [vmem:[%s3069_s11 + $0x169] ss:$2 sm:$0xff]  ;;  %v2124_v27 = vld [vmem:[%s3975_s1 + $0x600] sm:$0xff] }
  0x3f   : > { %984 = vmatprep.mubr.f32.mxu0 %v2781_v7  ;;  %2291 = vmatprep.subr.bf16.mxu1 %v2290_v33  ;;  %v1966_v25 = vld [vmem:[%s3975_s1 + $0x210] sm:$0xff]  ;;  %v2434_v29 = vpack.c.bf16 %v2127_v21, %v2125_v20  ;;  %v1969_v30 = vld [vmem:[%s3975_s1 + $0x228] sm:$0xff]  ;;  %v1971_v31 = vld [vmem:[%s3975_s1 + $0x238] sm:$0xff] }
  0x40   : > { %354 = vmatmul.mubr.f32.gmra.mrb[8].mxu1 %v1920_v39  ;;  %2419 = vmatprep.subr.bf16.mxu0 %v2418_v36  ;;  %v2126_v28 = vld [vmem:[%s3975_s1 + $0x610] sm:$0xff]  ;;  %v169_v32 = vld [vmem:[%s3069_s11] ss:$2 sm:$0xff]  ;;  %v2308_v33 = vpack.c.bf16 %v1966_v25, %v1964_v24  ;;  %v2131_v35 = vld [vmem:[%s3975_s1 + $0x638] sm:$0xff] }
  0x41   : > { %985 = vmatmul.mubr.f32.gmra.mrb[8].mxu0 %v2040_v43  ;;  %2293 = vmatpush1.bf16.msra.mxu1 %v2292_v40  ;;  %v2129_v34 = vld [vmem:[%s3975_s1 + $0x628] sm:$0xff]  ;;  %v2436_v37 = vpack.c.bf16 %v2126_v28, %v2124_v27  ;;  %v1968_v38 = vld [vmem:[%s3975_s1 + $0x220] sm:$0xff]  ;;  %v1970_v39 = vld [vmem:[%s3975_s1 + $0x230] sm:$0xff]  ;;  %v2310_v40 = vpack.c.bf16 %v1971_v31, %v1969_v30 }
  0x42   : > { %2421 = vmatpush1.bf16.msra.mxu0 %v2420_v44  ;;  %359 = vmatprep.mubr.f32.mxu1 %v2781_v7  ;;  %v2076_v36 = vld [vmem:[%s3069_s11 + $0x1a] ss:$2 sm:$0xff]  ;;  %v2130_v42 = vld [vmem:[%s3975_s1 + $0x630] sm:$0xff]  ;;  %v2438_v43 = vpack.c.bf16 %v2131_v35, %v2129_v34 }
  0x43   : > { %990 = vmatprep.mubr.f32.mxu0 %v2781_v7  ;;  %2295 = vmatprep.subr.bf16.mxu1 %v2294_v47  ;;  %v2128_v41 = vld [vmem:[%s3975_s1 + $0x620] sm:$0xff]  ;;  %v1973_v44 = vld [vmem:[%s3975_s1 + $0x248] sm:$0xff]  ;;  %v1975_v45 = vld [vmem:[%s3975_s1 + $0x258] sm:$0xff]  ;;  %v2312_v47 = vpack.c.bf16 %v1970_v39, %v1968_v38 }
  0x44   : > { %360 = vmatmul.mubr.f32.gmra.mrb[10].mxu1 %v1921_v53  ;;  %2423 = vmatprep.subr.bf16.mxu0 %v2422_v50  ;;  %v1909_v46 = vld [vmem:[%s3069_s11 + $0x30] ss:$2 sm:$0xff]  ;;  %v2133_v48 = vld [vmem:[%s3975_s1 + $0x648] sm:$0xff]  ;;  %v2440_v51 = vpack.c.bf16 %v2130_v42, %v2128_v41  ;;  %v1972_v52 = vld [vmem:[%s3975_s1 + $0x240] sm:$0xff] }
  0x45   : > { %991 = vmatmul.mubr.f32.gmra.mrb[10].mxu0 %v2041_v57  ;;  %2297 = vmatpush1.bf16.msra.mxu1 %v2296_v54  ;;  %v2135_v49 = vld [vmem:[%s3975_s1 + $0x658] sm:$0xff]  ;;  %v1974_v53 = vld [vmem:[%s3975_s1 + $0x250] sm:$0xff]  ;;  %v2314_v54 = vpack.c.bf16 %v1975_v45, %v1973_v44  ;;  %v2132_v55 = vld [vmem:[%s3975_s1 + $0x640] sm:$0xff] }
  0x46   : > { %2425 = vmatpush1.bf16.msra.mxu0 %v2424_v58  ;;  %365 = vmatprep.mubr.f32.mxu1 %v2781_v7  ;;  %v2077_v50 = vld [vmem:[%s3069_s11 + $0x4a] ss:$2 sm:$0xff]  ;;  %v2442_v57 = vpack.c.bf16 %v2135_v49, %v2133_v48  ;;  %v1976_v2 = vld [vmem:[%s3975_s1 + $0x260] sm:$0xff] }
  0x47   : > { %996 = vmatprep.mubr.f32.mxu0 %v2781_v7  ;;  %2299 = vmatprep.subr.bf16.mxu1 %v2298_v61  ;;  %v2134_v56 = vld [vmem:[%s3975_s1 + $0x650] sm:$0xff]  ;;  %v1977_v58 = vld [vmem:[%s3975_s1 + $0x268] sm:$0xff]  ;;  %v1979_v59 = vld [vmem:[%s3975_s1 + $0x278] sm:$0xff]  ;;  %v2316_v61 = vpack.c.bf16 %v1974_v53, %v1972_v52 }
  0x48   : > { %366 = vmatmul.mubr.f32.gmra.mrb[12].mxu1 %v1922_v3  ;;  %2427 = vmatprep.subr.bf16.mxu0 %v2426_v0  ;;  %v1910_v60 = vld [vmem:[%s3069_s11 + $0x60] ss:$2 sm:$0xff]  ;;  %v2139_v63 = vld [vmem:[%s3975_s1 + $0x678] sm:$0xff]  ;;  %v2444_v1 = vpack.c.bf16 %v2134_v56, %v2132_v55  ;;  %v1978_v3 = vld [vmem:[%s3975_s1 + $0x270] sm:$0xff] }
  0x49   : > { %997 = vmatmul.mubr.f32.gmra.mrb[12].mxu0 %v2042_v8  ;;  %2301 = vmatpush1.bf16.msra.mxu1 %v2300_v4  ;;  %v2137_v62 = vld [vmem:[%s3975_s1 + $0x668] sm:$0xff]  ;;  %v2318_v4 = vpack.c.bf16 %v1979_v59, %v1977_v58  ;;  %v2136_v5 = vld [vmem:[%s3975_s1 + $0x660] sm:$0xff]  ;;  %v2138_v6 = vld [vmem:[%s3975_s1 + $0x670] sm:$0xff] }
  0x4a   : > { %2429 = vmatpush1.bf16.msra.mxu0 %v2428_v9  ;;  %371 = vmatprep.mubr.f32.mxu1 %v2781_v7  ;;  %v2078_v0 = vld [vmem:[%s3069_s11 + $0x7a] ss:$2 sm:$0xff]  ;;  %v2446_v8 = vpack.c.bf16 %v2139_v63, %v2137_v62  ;;  %v2448_v16 = vpack.c.bf16 %v2138_v6, %v2136_v5  ;;  %v2142_v21 = vld [vmem:[%s3975_s1 + $0x690] sm:$0xff] }
  0x4b   : > { %1002 = vmatprep.mubr.f32.mxu0 %v2781_v7  ;;  %2303 = vmatprep.subr.bf16.mxu1 %v2302_v12  ;;  %v1981_v9 = vld [vmem:[%s3975_s1 + $0x288] sm:$0xff]  ;;  %v1983_v10 = vld [vmem:[%s3975_s1 + $0x298] sm:$0xff]  ;;  %v2320_v12 = vpack.c.bf16 %v1978_v3, %v1976_v2  ;;  %v1980_v17 = vld [vmem:[%s3975_s1 + $0x280] sm:$0xff] }
  0x4c   : > { %372 = vmatmul.mubr.f32.gmra.mrb[14].mxu1 %v1923_v18  ;;  %2431 = vmatprep.subr.bf16.mxu0 %v2430_v15  ;;  %v1911_v11 = vld [vmem:[%s3069_s11 + $0x90] ss:$2 sm:$0xff]  ;;  %v2141_v13 = vld [vmem:[%s3975_s1 + $0x688] sm:$0xff]  ;;  %v2140_v20 = vld [vmem:[%s3975_s1 + $0x680] sm:$0xff] }
  0x4d   : > { %1003 = vmatmul.mubr.f32.gmra.mrb[14].mxu0 %v2043_v22  ;;  %2305 = vmatpush1.bf16.msra.mxu1 %v2304_v19  ;;  %v2143_v14 = vld [vmem:[%s3975_s1 + $0x698] sm:$0xff]  ;;  %v1982_v18 = vld [vmem:[%s3975_s1 + $0x290] sm:$0xff]  ;;  %v2322_v19 = vpack.c.bf16 %v1983_v10, %v1981_v9  ;;  %v1912_v25 = vld [vmem:[%s3069_s11 + $0xc0] ss:$2 sm:$0xff]  ;;  %v2452_v30 = vpack.c.bf16 %v2142_v21, %v2140_v20 }
  0x4e   : > { %2433 = vmatpush1.bf16.msra.mxu0 %v2432_v23  ;;  %442 = vmatprep.mubr.f32.mxu1 %v2781_v7  ;;  %v2079_v15 = vld [vmem:[%s3069_s11 + $0xaa] ss:$2 sm:$0xff]  ;;  %v2450_v22 = vpack.c.bf16 %v2143_v14, %v2141_v13  ;;  %v1984_v31 = vld [vmem:[%s3975_s1 + $0x2a0] sm:$0xff] }
  0x4f   : > { %1138 = vmatprep.mubr.f32.mxu0 %v2781_v7  ;;  %2307 = vmatprep.subr.bf16.mxu1 %v2306_v26  ;;  %v1985_v23 = vld [vmem:[%s3975_s1 + $0x2a8] sm:$0xff]  ;;  %v1987_v24 = vld [vmem:[%s3975_s1 + $0x2b8] sm:$0xff]  ;;  %v2324_v26 = vpack.c.bf16 %v1982_v18, %v1980_v17  ;;  %v2144_v34 = vld [vmem:[%s3975_s1 + $0x6a0] sm:$0xff] }
  0x50   : > { %443 = vmatmul.mubr.f32.vlgmr.msra.gmra.mrb[0].mxu1 %v169_v32  ;;  %2435 = vmatprep.subr.bf16.mxu0 %v2434_v29  ;;  %v2145_v27 = vld [vmem:[%s3975_s1 + $0x6a8] sm:$0xff]  ;;  %v2147_v28 = vld [vmem:[%s3975_s1 + $0x6b8] sm:$0xff]  ;;  %v1986_v32 = vld [vmem:[%s3975_s1 + $0x2b0] sm:$0xff] }
  0x51   : > { %1139 = vmatmul.mubr.f32.vlgmr.msra.gmra.mrb[0].mxu0 %v2076_v36  ;;  %2309 = vmatpush1.bf16.msra.mxu1 %v2308_v33  ;;  %v2080_v29 = vld [vmem:[%s3069_s11 + $0xda] ss:$2 sm:$0xff]  ;;  %v2326_v33 = vpack.c.bf16 %v1987_v24, %v1985_v23  ;;  %v2146_v35 = vld [vmem:[%s3975_s1 + $0x6b0] sm:$0xff]  ;;  %v2454_v36 = vpack.c.bf16 %v2147_v28, %v2145_v27 }
  0x52   : > { %2437 = vmatpush1.bf16.msra.mxu0 %v2436_v37  ;;  %448 = vmatprep.mubr.f32.mxu1 %v2781_v7  ;;  %v1989_v37 = vld [vmem:[%s3975_s1 + $0x2c8] sm:$0xff]  ;;  %v1991_v38 = vld [vmem:[%s3975_s1 + $0x2d8] sm:$0xff]  ;;  %v2456_v44 = vpack.c.bf16 %v2146_v35, %v2144_v34  ;;  %v1988_v45 = vld [vmem:[%s3975_s1 + $0x2c0] sm:$0xff] }
  0x53   : > { %1144 = vmatprep.mubr.f32.mxu0 %v2781_v7  ;;  %2311 = vmatprep.subr.bf16.mxu1 %v2310_v40  ;;  %v1913_v39 = vld [vmem:[%s3069_s11 + $0xf0] ss:$2 sm:$0xff]  ;;  %v2328_v40 = vpack.c.bf16 %v1986_v32, %v1984_v31  ;;  %v2149_v41 = vld [vmem:[%s3975_s1 + $0x6c8] sm:$0xff]  ;;  %v2148_v48 = vld [vmem:[%s3975_s1 + $0x6c0] sm:$0xff] }
  0x54   : > { %449 = vmatmul.mubr.f32.gmra.mrb[2].mxu1 %v1909_v46  ;;  %2439 = vmatprep.subr.bf16.mxu0 %v2438_v43  ;;  %v2151_v42 = vld [vmem:[%s3975_s1 + $0x6d8] sm:$0xff]  ;;  %v1990_v46 = vld [vmem:[%s3975_s1 + $0x2d0] sm:$0xff]  ;;  %v1914_v53 = vld [vmem:[%s3069_s11 + $0x120] ss:$2 sm:$0xff] }
  0x55   : > { %1145 = vmatmul.mubr.f32.gmra.mrb[2].mxu0 %v2077_v50  ;;  %2313 = vmatpush1.bf16.msra.mxu1 %v2312_v47  ;;  %v2081_v43 = vld [vmem:[%s3069_s11 + $0x10a] ss:$2 sm:$0xff]  ;;  %v2330_v47 = vpack.c.bf16 %v1991_v38, %v1989_v37  ;;  %v2458_v50 = vpack.c.bf16 %v2151_v42, %v2149_v41  ;;  %v1992_v59 = vld [vmem:[%s3975_s1 + $0x2e0] sm:$0xff] }
  0x56   : > { %2441 = vmatpush1.bf16.msra.mxu0 %v2440_v51  ;;  %454 = vmatprep.mubr.f32.mxu1 %v2781_v7  ;;  %v2150_v49 = vld [vmem:[%s3975_s1 + $0x6d0] sm:$0xff]  ;;  %v1993_v51 = vld [vmem:[%s3975_s1 + $0x2e8] sm:$0xff]  ;;  %v1995_v52 = vld [vmem:[%s3975_s1 + $0x2f8] sm:$0xff] }
  0x57   : > { %1150 = vmatprep.mubr.f32.mxu0 %v2781_v7  ;;  %2315 = vmatprep.subr.bf16.mxu1 %v2314_v54  ;;  %v2332_v54 = vpack.c.bf16 %v1990_v46, %v1988_v45  ;;  %v2153_v55 = vld [vmem:[%s3975_s1 + $0x6e8] sm:$0xff]  ;;  %v2155_v56 = vld [vmem:[%s3975_s1 + $0x6f8] sm:$0xff]  ;;  %v2460_v58 = vpack.c.bf16 %v2150_v49, %v2148_v48  ;;  %v2152_v62 = vld [vmem:[%s3975_s1 + $0x6e0] sm:$0xff] }
  0x58   : > { %455 = vmatmul.mubr.f32.gmra.mrb[4].mxu1 %v1910_v60  ;;  %2443 = vmatprep.subr.bf16.mxu0 %v2442_v57  ;;  %v2082_v57 = vld [vmem:[%s3069_s11 + $0x13a] ss:$2 sm:$0xff]  ;;  %v1994_v60 = vld [vmem:[%s3975_s1 + $0x2f0] sm:$0xff] }
  0x59   : > { %1151 = vmatmul.mubr.f32.gmra.mrb[4].mxu0 %v2078_v0  ;;  %2317 = vmatpush1.bf16.msra.mxu1 %v2316_v61  ;;  %v2334_v61 = vpack.c.bf16 %v1995_v52, %v1993_v51  ;;  %v2154_v63 = vld [vmem:[%s3975_s1 + $0x6f0] sm:$0xff]  ;;  %v2462_v0 = vpack.c.bf16 %v2155_v56, %v2153_v55  ;;  %v2007_v2 = vld [vmem:[%s3975_s1 + $0x318] sm:$0xff]  ;;  %v2165_v5 = vld [vmem:[%s3975_s1 + $0x708] sm:$0xff] }
  0x5a   : > { %2445 = vmatpush1.bf16.msra.mxu0 %v2444_v1  ;;  %460 = vmatprep.mubr.f32.mxu1 %v2781_v7  ;;  %v2005_v1 = vld [vmem:[%s3975_s1 + $0x308] sm:$0xff]  ;;  %v1915_v3 = vld [vmem:[%s3069_s11 + $0x150] ss:$2 sm:$0xff]  ;;  %v2464_v9 = vpack.c.bf16 %v2154_v63, %v2152_v62  ;;  %v2004_v10 = vld [vmem:[%s3975_s1 + $0x300] sm:$0xff] }
  0x5b   : > { %1156 = vmatprep.mubr.f32.mxu0 %v2781_v7  ;;  %2319 = vmatprep.subr.bf16.mxu1 %v2318_v4  ;;  %v2336_v4 = vpack.c.bf16 %v1994_v60, %v1992_v59  ;;  %v2167_v6 = vld [vmem:[%s3975_s1 + $0x718] sm:$0xff]  ;;  %v2164_v13 = vld [vmem:[%s3975_s1 + $0x700] sm:$0xff]  ;;  %v2166_v14 = vld [vmem:[%s3975_s1 + $0x710] sm:$0xff] }
  0x5c   : > { %461 = vmatmul.mubr.f32.gmra.mrb[6].mxu1 %v1911_v11  ;;  %2447 = vmatprep.subr.bf16.mxu0 %v2446_v8  ;;  %v2083_v8 = vld [vmem:[%s3069_s11 + $0x16a] ss:$2 sm:$0xff]  ;;  %v2468_v23 = vpack.c.bf16 %v2166_v14, %v2164_v13  ;;  %v2008_v24 = vld [vmem:[%s3975_s1 + $0x320] sm:$0xff] }
  0x5d   : > { %1157 = vmatmul.mubr.f32.gmra.mrb[6].mxu0 %v2079_v15  ;;  %2321 = vmatpush1.bf16.msra.mxu1 %v2320_v12  ;;  %v2006_v11 = vld [vmem:[%s3975_s1 + $0x310] sm:$0xff]  ;;  %v2338_v12 = vpack.c.bf16 %v2007_v2, %v2005_v1  ;;  %v2466_v15 = vpack.c.bf16 %v2167_v6, %v2165_v5  ;;  %v2011_v17 = vld [vmem:[%s3975_s1 + $0x338] sm:$0xff]  ;;  %v2169_v20 = vld [vmem:[%s3975_s1 + $0x728] sm:$0xff] }
  0x5e   : > { %2449 = vmatpush1.bf16.msra.mxu0 %v2448_v16  ;;  %466 = vmatprep.mubr.f32.mxu1 %v2781_v7  ;;  %v2009_v16 = vld [vmem:[%s3975_s1 + $0x328] sm:$0xff]  ;;  %v2171_v21 = vld [vmem:[%s3975_s1 + $0x738] sm:$0xff]  ;;  %v2168_v27 = vld [vmem:[%s3975_s1 + $0x720] sm:$0xff] }
  0x5f   : > { %1162 = vmatprep.mubr.f32.mxu0 %v2781_v7  ;;  %2323 = vmatprep.subr.bf16.mxu1 %v2322_v19  ;;  %v1956_v18 = vld [vmem:[%s3069_s11 + $0x2] ss:$2 sm:$0xff]  ;;  %v2340_v19 = vpack.c.bf16 %v2006_v11, %v2004_v10  ;;  %v2015_v31 = vld [vmem:[%s3975_s1 + $0x358] sm:$0xff] }
  0x60   : > { %467 = vmatmul.mubr.f32.gmra.mrb[8].mxu1 %v1912_v25  ;;  %2451 = vmatprep.subr.bf16.mxu0 %v2450_v22  ;;  %v2116_v22 = vld [vmem:[%s3069_s11 + $0x30] ss:$2 sm:$0xff]  ;;  %v2173_v34 = vld [vmem:[%s3975_s1 + $0x748] sm:$0xff]  ;;  %v2012_v38 = vld [vmem:[%s3975_s1 + $0x340] sm:$0xff] }
  0x61   : > { %1163 = vmatmul.mubr.f32.gmra.mrb[8].mxu0 %v2080_v29  ;;  %2325 = vmatpush1.bf16.msra.mxu1 %v2324_v26  ;;  %v2010_v25 = vld [vmem:[%s3975_s1 + $0x330] sm:$0xff]  ;;  %v2342_v26 = vpack.c.bf16 %v2011_v17, %v2009_v16  ;;  %v2470_v29 = vpack.c.bf16 %v2171_v21, %v2169_v20  ;;  %v2175_v35 = vld [vmem:[%s3975_s1 + $0x758] sm:$0xff]  ;;  %v2172_v41 = vld [vmem:[%s3975_s1 + $0x740] sm:$0xff] }
  0x62   : > { %2453 = vmatpush1.bf16.msra.mxu0 %v2452_v30  ;;  %472 = vmatprep.mubr.f32.mxu1 %v2781_v7  ;;  %v2170_v28 = vld [vmem:[%s3975_s1 + $0x730] sm:$0xff]  ;;  %v2013_v30 = vld [vmem:[%s3975_s1 + $0x348] sm:$0xff]  ;;  %v2019_v45 = vld [vmem:[%s3975_s1 + $0x378] sm:$0xff] }
  0x63   : > { %1168 = vmatprep.mubr.f32.mxu0 %v2781_v7  ;;  %2327 = vmatprep.subr.bf16.mxu1 %v2326_v33  ;;  %v1957_v32 = vld [vmem:[%s3069_s11 + $0x32] ss:$2 sm:$0xff]  ;;  %v2344_v33 = vpack.c.bf16 %v2010_v25, %v2008_v24  ;;  %v2472_v37 = vpack.c.bf16 %v2170_v28, %v2168_v27  ;;  %v1958_v46 = vld [vmem:[%s3069_s11 + $0x62] ss:$2 sm:$0xff] }
  0x64   : > { %473 = vmatmul.mubr.f32.gmra.mrb[10].mxu1 %v1913_v39  ;;  %2455 = vmatprep.subr.bf16.mxu0 %v2454_v36  ;;  %v2117_v36 = vld [vmem:[%s3069_s11 + $0x60] ss:$2 sm:$0xff]  ;;  %v2014_v39 = vld [vmem:[%s3975_s1 + $0x350] sm:$0xff]  ;;  %v2179_v49 = vld [vmem:[%s3975_s1 + $0x778] sm:$0xff] }
  0x65   : > { %1169 = vmatmul.mubr.f32.gmra.mrb[10].mxu0 %v2081_v43  ;;  %2329 = vmatpush1.bf16.msra.mxu1 %v2328_v40  ;;  %v2346_v40 = vpack.c.bf16 %v2015_v31, %v2013_v30  ;;  %v2174_v42 = vld [vmem:[%s3975_s1 + $0x750] sm:$0xff]  ;;  %v2474_v43 = vpack.c.bf16 %v2175_v35, %v2173_v34  ;;  %v2177_v48 = vld [vmem:[%s3975_s1 + $0x768] sm:$0xff]  ;;  %v2016_v52 = vld [vmem:[%s3975_s1 + $0x360] sm:$0xff] }
  0x66   : > { %2457 = vmatpush1.bf16.msra.mxu0 %v2456_v44  ;;  %478 = vmatprep.mubr.f32.mxu1 %v2781_v7  ;;  %v2017_v44 = vld [vmem:[%s3975_s1 + $0x368] sm:$0xff]  ;;  %v2476_v51 = vpack.c.bf16 %v2174_v42, %v2172_v41  ;;  %v2176_v55 = vld [vmem:[%s3975_s1 + $0x760] sm:$0xff]  ;;  %v2178_v56 = vld [vmem:[%s3975_s1 + $0x770] sm:$0xff] }
  0x67   : > { %1174 = vmatprep.mubr.f32.mxu0 %v2781_v7  ;;  %2331 = vmatprep.subr.bf16.mxu1 %v2330_v47  ;;  %v2348_v47 = vpack.c.bf16 %v2014_v39, %v2012_v38  ;;  %v2023_v59 = vld [vmem:[%s3975_s1 + $0x398] sm:$0xff]  ;;  %v2181_v62 = vld [vmem:[%s3975_s1 + $0x788] sm:$0xff]  ;;  %v2480_v1 = vpack.c.bf16 %v2178_v56, %v2176_v55  ;;  %v2020_v2 = vld [vmem:[%s3975_s1 + $0x380] sm:$0xff] }
  0x68   : > { %479 = vmatmul.mubr.f32.gmra.mrb[12].mxu1 %v1914_v53  ;;  %2459 = vmatprep.subr.bf16.mxu0 %v2458_v50  ;;  %v2118_v50 = vld [vmem:[%s3069_s11 + $0x90] ss:$2 sm:$0xff]  ;;  %v2180_v5 = vld [vmem:[%s3975_s1 + $0x780] sm:$0xff]  ;;  %v2185_v13 = vld [vmem:[%s3975_s1 + $0x7a8] sm:$0xff] }
  0x69   : > { %1175 = vmatmul.mubr.f32.gmra.mrb[12].mxu0 %v2082_v57  ;;  %2333 = vmatpush1.bf16.msra.mxu1 %v2332_v54  ;;  %v2018_v53 = vld [vmem:[%s3975_s1 + $0x370] sm:$0xff]  ;;  %v2350_v54 = vpack.c.bf16 %v2019_v45, %v2017_v44  ;;  %v2478_v57 = vpack.c.bf16 %v2179_v49, %v2177_v48  ;;  %v2183_v63 = vld [vmem:[%s3975_s1 + $0x798] sm:$0xff]  ;;  %v2024_v17 = vld [vmem:[%s3975_s1 + $0x3a0] sm:$0xff] }
  0x6a   : > { %2461 = vmatpush1.bf16.msra.mxu0 %v2460_v58  ;;  %484 = vmatprep.mubr.f32.mxu1 %v2781_v7  ;;  %v2021_v58 = vld [vmem:[%s3975_s1 + $0x388] sm:$0xff]  ;;  %v1959_v60 = vld [vmem:[%s3069_s11 + $0x92] ss:$2 sm:$0xff] }
  0x6b   : > { %1180 = vmatprep.mubr.f32.mxu0 %v2781_v7  ;;  %2335 = vmatprep.subr.bf16.mxu1 %v2334_v61  ;;  %v2352_v61 = vpack.c.bf16 %v2018_v53, %v2016_v52  ;;  %v2182_v6 = vld [vmem:[%s3975_s1 + $0x790] sm:$0xff]  ;;  %v2027_v10 = vld [vmem:[%s3975_s1 + $0x3b8] sm:$0xff]  ;;  %v2184_v20 = vld [vmem:[%s3975_s1 + $0x7a0] sm:$0xff] }
  0x6c   : > { %485 = vmatmul.mubr.f32.gmra.mrb[14].mxu1 %v1915_v3  ;;  %2463 = vmatprep.subr.bf16.mxu0 %v2462_v0  ;;  %v2119_v0 = vld [vmem:[%s3069_s11 + $0xc0] ss:$2 sm:$0xff]  ;;  %v2022_v3 = vld [vmem:[%s3975_s1 + $0x390] sm:$0xff]  ;;  %v2187_v14 = vld [vmem:[%s3975_s1 + $0x7b8] sm:$0xff]  ;;  %v2484_v16 = vpack.c.bf16 %v2182_v6, %v2180_v5 }
  0x6d   : > { %1181 = vmatmul.mubr.f32.gmra.mrb[14].mxu0 %v2083_v8  ;;  %2337 = vmatpush1.bf16.msra.mxu1 %v2336_v4  ;;  %v2354_v4 = vpack.c.bf16 %v2023_v59, %v2021_v58  ;;  %v2482_v8 = vpack.c.bf16 %v2183_v63, %v2181_v62  ;;  %v1960_v11 = vld [vmem:[%s3069_s11 + $0xc2] ss:$2 sm:$0xff]  ;;  %v2031_v24 = vld [vmem:[%s3975_s1 + $0x3d8] sm:$0xff] }
  0x6e   : > { %2465 = vmatpush1.bf16.msra.mxu0 %v2464_v9  ;;  %604 = vmatprep.mubr.f32.mxu1 %v2781_v7  ;;  %v2025_v9 = vld [vmem:[%s3975_s1 + $0x3a8] sm:$0xff]  ;;  %v2186_v21 = vld [vmem:[%s3975_s1 + $0x7b0] sm:$0xff]  ;;  %v2191_v28 = vld [vmem:[%s3975_s1 + $0x7d8] sm:$0xff] }
  0x6f   : > { %1316 = vmatprep.mubr.f32.mxu0 %v2781_v7  ;;  %2339 = vmatprep.subr.bf16.mxu1 %v2338_v12  ;;  %v2356_v12 = vpack.c.bf16 %v2022_v3, %v2020_v2  ;;  %v1961_v25 = vld [vmem:[%s3069_s11 + $0xf2] ss:$2 sm:$0xff]  ;;  %v2189_v27 = vld [vmem:[%s3975_s1 + $0x7c8] sm:$0xff]  ;;  %v2488_v30 = vpack.c.bf16 %v2186_v21, %v2184_v20 }
  0x70   : > { %605 = vmatmul.mubr.f32.vlgmr.msra.gmra.mrb[0].mxu1 %v1956_v18  ;;  %2467 = vmatprep.subr.bf16.mxu0 %v2466_v15  ;;  %v2120_v15 = vld [vmem:[%s3069_s11 + $0xf0] ss:$2 sm:$0xff]  ;;  %v2028_v31 = vld [vmem:[%s3975_s1 + $0x3c0] sm:$0xff]  ;;  %v2193_v41 = vld [vmem:[%s3975_s1 + $0x7e8] sm:$0xff] }
  0x71   : > { %1317 = vmatmul.mubr.f32.vlgmr.msra.gmra.mrb[0].mxu0 %v2116_v22  ;;  %2341 = vmatpush1.bf16.msra.mxu1 %v2340_v19  ;;  %v2026_v18 = vld [vmem:[%s3975_s1 + $0x3b0] sm:$0xff]  ;;  %v2358_v19 = vpack.c.bf16 %v2027_v10, %v2025_v9  ;;  %v2486_v22 = vpack.c.bf16 %v2187_v14, %v2185_v13  ;;  %v2188_v34 = vld [vmem:[%s3975_s1 + $0x7c0] sm:$0xff]  ;;  %v2035_v38 = vld [vmem:[%s3975_s1 + $0x3f8] sm:$0xff] }
  0x72   : > { %2469 = vmatpush1.bf16.msra.mxu0 %v2468_v23  ;;  %610 = vmatprep.mubr.f32.mxu1 %v2781_v7  ;;  %v2029_v23 = vld [vmem:[%s3975_s1 + $0x3c8] sm:$0xff]  ;;  %v2190_v35 = vld [vmem:[%s3975_s1 + $0x7d0] sm:$0xff]  ;;  %v2195_v42 = vld [vmem:[%s3975_s1 + $0x7f8] sm:$0xff] }
  0x73   : > { %1322 = vmatprep.mubr.f32.mxu0 %v2781_v7  ;;  %2343 = vmatprep.subr.bf16.mxu1 %v2342_v26  ;;  %v2360_v26 = vpack.c.bf16 %v2026_v18, %v2024_v17  ;;  %v1962_v39 = vld [vmem:[%s3069_s11 + $0x122] ss:$2 sm:$0xff]  ;;  %v2492_v44 = vpack.c.bf16 %v2190_v35, %v2188_v34  ;;  %v2207_v52 = vld [vmem:[%s3975_s1 + $0x818] sm:$0xff]  ;;  %v2157_v9 = vld [vmem:[%s3069_s11 + $0x61] ss:$2 sm:$0xff] }
  0x74   : > { %611 = vmatmul.mubr.f32.gmra.mrb[2].mxu1 %v1957_v32  ;;  %2471 = vmatprep.subr.bf16.mxu0 %v2470_v29  ;;  %v2121_v29 = vld [vmem:[%s3069_s11 + $0x120] ss:$2 sm:$0xff]  ;;  %v2030_v32 = vld [vmem:[%s3975_s1 + $0x3d0] sm:$0xff]  ;;  %v2215_v5 = vld [vmem:[%s3975_s1 + $0x858] sm:$0xff] }
  0x75   : > { %1323 = vmatmul.mubr.f32.gmra.mrb[2].mxu0 %v2117_v36  ;;  %2345 = vmatpush1.bf16.msra.mxu1 %v2344_v33  ;;  %v2362_v33 = vpack.c.bf16 %v2031_v24, %v2029_v23  ;;  %v2490_v36 = vpack.c.bf16 %v2191_v28, %v2189_v27  ;;  %v2032_v45 = vld [vmem:[%s3975_s1 + $0x3e0] sm:$0xff]  ;;  %v2194_v49 = vld [vmem:[%s3975_s1 + $0x7f0] sm:$0xff]  ;;  %v2217_v13 = vld [vmem:[%s3975_s1 + $0x868] sm:$0xff] }
  0x76   : > { %2473 = vmatpush1.bf16.msra.mxu0 %v2472_v37  ;;  %616 = vmatprep.mubr.f32.mxu1 %v2781_v7  ;;  %v2033_v37 = vld [vmem:[%s3975_s1 + $0x3e8] sm:$0xff]  ;;  %v2192_v48 = vld [vmem:[%s3975_s1 + $0x7e0] sm:$0xff]  ;;  %v2206_v58 = vld [vmem:[%s3975_s1 + $0x810] sm:$0xff] }
  0x77   : > { %1328 = vmatprep.mubr.f32.mxu0 %v2781_v7  ;;  %2347 = vmatprep.subr.bf16.mxu1 %v2346_v40  ;;  %v2364_v40 = vpack.c.bf16 %v2030_v32, %v2028_v31  ;;  %v1963_v53 = vld [vmem:[%s3069_s11 + $0x152] ss:$2 sm:$0xff]  ;;  %v2496_v56 = vpack.c.bf16 %v2194_v49, %v2192_v48  ;;  %v2158_v17 = vld [vmem:[%s3069_s11 + $0x91] ss:$2 sm:$0xff]  ;;  %v2221_v21 = vld [vmem:[%s3975_s1 + $0x888] sm:$0xff] }
  0x78   : > { %617 = vmatmul.mubr.f32.gmra.mrb[4].mxu1 %v1958_v46  ;;  %2475 = vmatprep.subr.bf16.mxu0 %v2474_v43  ;;  %v2122_v43 = vld [vmem:[%s3069_s11 + $0x150] ss:$2 sm:$0xff]  ;;  %v2123_v55 = vld [vmem:[%s3069_s11 + $0x180] ss:$2 sm:$0xff]  ;;  %v2162_v49 = vld [vmem:[%s3069_s11 + $0x151] ss:$2 sm:$0xff] }
  0x79   : > { %1329 = vmatmul.mubr.f32.gmra.mrb[4].mxu0 %v2118_v50  ;;  %2349 = vmatpush1.bf16.msra.mxu1 %v2348_v47  ;;  %v2034_v46 = vld [vmem:[%s3975_s1 + $0x3f0] sm:$0xff]  ;;  %v2366_v47 = vpack.c.bf16 %v2035_v38, %v2033_v37  ;;  %v2494_v50 = vpack.c.bf16 %v2195_v42, %v2193_v41  ;;  %v1996_v62 = vld [vmem:[%s3069_s11 + $0x18] ss:$2 sm:$0xff]  ;;  %v2229_v37 = vld [vmem:[%s3975_s1 + $0x8c8] sm:$0xff] }
  0x7a   : > { %2477 = vmatpush1.bf16.msra.mxu0 %v2476_v51  ;;  %622 = vmatprep.mubr.f32.mxu1 %v2781_v7  ;;  %v2205_v51 = vld [vmem:[%s3975_s1 + $0x808] sm:$0xff]  ;;  %v2210_v2 = vld [vmem:[%s3975_s1 + $0x830] sm:$0xff]  ;;  %v2212_v10 = vld [vmem:[%s3975_s1 + $0x840] sm:$0xff] }
  0x7b   : > { %1334 = vmatprep.mubr.f32.mxu0 %v2781_v7  ;;  %2351 = vmatprep.subr.bf16.mxu1 %v2350_v54  ;;  %v2368_v54 = vpack.c.bf16 %v2034_v46, %v2032_v45  ;;  %v2498_v59 = vpack.c.bf16 %v2207_v52, %v2205_v51  ;;  %v1997_v6 = vld [vmem:[%s3069_s11 + $0x48] ss:$2 sm:$0xff]  ;;  %v2219_v14 = vld [vmem:[%s3975_s1 + $0x878] sm:$0xff]  ;;  %v2216_v18 = vld [vmem:[%s3975_s1 + $0x860] sm:$0xff] }
  0x7c   : > { %623 = vmatmul.mubr.f32.gmra.mrb[6].mxu1 %v1959_v60  ;;  %2479 = vmatprep.subr.bf16.mxu0 %v2478_v57  ;;  %v2204_v57 = vld [vmem:[%s3975_s1 + $0x800] sm:$0xff]  ;;  %v2209_v60 = vld [vmem:[%s3975_s1 + $0x828] sm:$0xff]  ;;  %v2510_v20 = vpack.c.bf16 %v2219_v14, %v2217_v13  ;;  %v2222_v27 = vld [vmem:[%s3975_s1 + $0x890] sm:$0xff]  ;;  %v1739_v14 = vlaneseq }
  0x7d   : > { %1335 = vmatmul.mubr.f32.gmra.mrb[6].mxu0 %v2119_v0  ;;  %2353 = vmatpush1.bf16.msra.mxu1 %v2352_v61  ;;  %v2211_v61 = vld [vmem:[%s3975_s1 + $0x838] sm:$0xff]  ;;  %v2500_v63 = vpack.c.bf16 %v2206_v58, %v2204_v57  ;;  %v1999_v23 = vld [vmem:[%s3069_s11 + $0xa8] ss:$2 sm:$0xff]  ;;  %v2224_v34 = vld [vmem:[%s3975_s1 + $0x8a0] sm:$0xff] }
  0x7e   : > { %2481 = vmatpush1.bf16.msra.mxu0 %v2480_v1  ;;  %628 = vmatprep.mubr.f32.mxu1 %v2781_v7  ;;  %v2156_v0 = vld [vmem:[%s3069_s11 + $0x31] ss:$2 sm:$0xff]  ;;  %v2208_v1 = vld [vmem:[%s3975_s1 + $0x820] sm:$0xff]  ;;  %v2502_v3 = vpack.c.bf16 %v2211_v61, %v2209_v60  ;;  %v2233_v45 = vld [vmem:[%s3975_s1 + $0x8e8] sm:$0xff] }
  0x7f   : > { %1340 = vmatprep.mubr.f32.mxu0 %v2781_v7  ;;  %2355 = vmatprep.subr.bf16.mxu1 %v2354_v4  ;;  %v2213_v4 = vld [vmem:[%s3975_s1 + $0x848] sm:$0xff]  ;;  %v2000_v31 = vld [vmem:[%s3069_s11 + $0xd8] ss:$2 sm:$0xff]  ;;  %v2226_v35 = vld [vmem:[%s3975_s1 + $0x8b0] sm:$0xff] }
  0x80   : > { %629 = vmatmul.mubr.f32.gmra.mrb[8].mxu1 %v1960_v11  ;;  %2483 = vmatprep.subr.bf16.mxu0 %v2482_v8  ;;  %v2504_v8 = vpack.c.bf16 %v2210_v2, %v2208_v1  ;;  %v2214_v11 = vld [vmem:[%s3975_s1 + $0x850] sm:$0xff]  ;;  %v2231_v38 = vld [vmem:[%s3975_s1 + $0x8d8] sm:$0xff]  ;;  %v2161_v41 = vld [vmem:[%s3069_s11 + $0x121] ss:$2 sm:$0xff] }
  0x81   : > { %1341 = vmatmul.mubr.f32.gmra.mrb[8].mxu0 %v2120_v15  ;;  %2357 = vmatpush1.bf16.msra.mxu1 %v2356_v12  ;;  %v2506_v12 = vpack.c.bf16 %v2215_v5, %v2213_v4  ;;  %v1998_v15 = vld [vmem:[%s3069_s11 + $0x78] ss:$2 sm:$0xff]  ;;  %v2234_v51 = vld [vmem:[%s3975_s1 + $0x8f0] sm:$0xff] }
  0x82   : > { %2485 = vmatpush1.bf16.msra.mxu0 %v2484_v16  ;;  %634 = vmatprep.mubr.f32.mxu1 %v2781_v7  ;;  %v2508_v16 = vpack.c.bf16 %v2214_v11, %v2212_v10  ;;  %v2228_v42 = vld [vmem:[%s3975_s1 + $0x8c0] sm:$0xff]  ;;  %v2235_v46 = vld [vmem:[%s3975_s1 + $0x8f8] sm:$0xff] }
  0x83   : > { %1346 = vmatprep.mubr.f32.mxu0 %v2781_v7  ;;  %2359 = vmatprep.subr.bf16.mxu1 %v2358_v19  ;;  %v2218_v19 = vld [vmem:[%s3975_s1 + $0x870] sm:$0xff]  ;;  %v2526_v52 = vpack.c.bf16 %v2235_v46, %v2233_v45 }
  0x84   : > { %635 = vmatmul.mubr.f32.gmra.mrb[10].mxu1 %v1961_v25  ;;  %2487 = vmatprep.subr.bf16.mxu0 %v2486_v22  ;;  %v2223_v22 = vld [vmem:[%s3975_s1 + $0x898] sm:$0xff]  ;;  %v2512_v24 = vpack.c.bf16 %v2218_v19, %v2216_v18  ;;  %v2159_v25 = vld [vmem:[%s3069_s11 + $0xc1] ss:$2 sm:$0xff]  ;;  %v2201_v58 = vld [vmem:[%s3069_s11 + $0x122] ss:$2 sm:$0xff] }
  0x85   : > { %1347 = vmatmul.mubr.f32.gmra.mrb[10].mxu0 %v2121_v29  ;;  %2361 = vmatpush1.bf16.msra.mxu1 %v2360_v26  ;;  %v2220_v26 = vld [vmem:[%s3975_s1 + $0x880] sm:$0xff]  ;;  %v2514_v28 = vpack.c.bf16 %v2223_v22, %v2221_v21  ;;  %v2225_v29 = vld [vmem:[%s3975_s1 + $0x8a8] sm:$0xff]  ;;  %v1740_v21 = vshrl.u32 %v1739_v14, 7 }
  0x86   : > { %2489 = vmatpush1.bf16.msra.mxu0 %v2488_v30  ;;  %640 = vmatprep.mubr.f32.mxu1 %v2781_v7  ;;  %v2227_v30 = vld [vmem:[%s3975_s1 + $0x8b8] sm:$0xff]  ;;  %v2516_v32 = vpack.c.bf16 %v2222_v27, %v2220_v26 }
  0x87   : > { %1352 = vmatprep.mubr.f32.mxu0 %v2781_v7  ;;  %2363 = vmatprep.subr.bf16.mxu1 %v2362_v33  ;;  %v2160_v33 = vld [vmem:[%s3069_s11 + $0xf1] ss:$2 sm:$0xff]  ;;  %v2196_v57 = vld [vmem:[%s3069_s11 + $0x32] ss:$2 sm:$0xff] }
  0x88   : > { %641 = vmatmul.mubr.f32.gmra.mrb[12].mxu1 %v1962_v39  ;;  %2491 = vmatprep.subr.bf16.mxu0 %v2490_v36  ;;  %v2518_v36 = vpack.c.bf16 %v2227_v30, %v2225_v29  ;;  %v2001_v39 = vld [vmem:[%s3069_s11 + $0x108] ss:$2 sm:$0xff]  ;;  %v1737_v30 = vld [vmem:[%s3976_s2] sm:$0x3] }
  0x89   : > { %1353 = vmatmul.mubr.f32.gmra.mrb[12].mxu0 %v2122_v43  ;;  %2365 = vmatpush1.bf16.msra.mxu1 %v2364_v40  ;;  %v2520_v40 = vpack.c.bf16 %v2226_v35, %v2224_v34  ;;  %v2230_v43 = vld [vmem:[%s3975_s1 + $0x8d0] sm:$0xff] }
  0x8a   : > { %2493 = vmatpush1.bf16.msra.mxu0 %v2492_v44  ;;  %646 = vmatprep.mubr.f32.mxu1 %v2781_v7  ;;  %v2522_v44 = vpack.c.bf16 %v2231_v38, %v2229_v37  ;;  %v2524_v48 = vpack.c.bf16 %v2230_v43, %v2228_v42  ;;  %v2202_v60 = vld [vmem:[%s3069_s11 + $0x152] ss:$2 sm:$0xff] }
  0x8b   : > { %1358 = vmatprep.mubr.f32.mxu0 %v2781_v7  ;;  %2367 = vmatprep.subr.bf16.mxu1 %v2366_v47  ;;  %v2002_v47 = vld [vmem:[%s3069_s11 + $0x138] ss:$2 sm:$0xff] }
  0x8c   : > { %647 = vmatmul.mubr.f32.gmra.mrb[14].mxu1 %v1963_v53  ;;  %2495 = vmatprep.subr.bf16.mxu0 %v2494_v50  ;;  %v2232_v50 = vld [vmem:[%s3975_s1 + $0x8e0] sm:$0xff]  ;;  %v2003_v53 = vld [vmem:[%s3069_s11 + $0x168] ss:$2 sm:$0xff] }
  0x8d   : > { %1359 = vmatmul.mubr.f32.gmra.mrb[14].mxu0 %v2123_v55  ;;  %2369 = vmatpush1.bf16.msra.mxu1 %v2368_v54  ;;  %v2528_v54 = vpack.c.bf16 %v2234_v51, %v2232_v50  ;;  %v2163_v55 = vld [vmem:[%s3069_s11 + $0x181] ss:$2 sm:$0xff]  ;;  %v2198_v61 = vld [vmem:[%s3069_s11 + $0x92] ss:$2 sm:$0xff] }
  0x8e   : > { %2497 = vmatpush1.bf16.msra.mxu0 %v2496_v56  ;;  %782 = vmatprep.mubr.f32.mxu1 %v2781_v7  ;;  %v2200_v56 = vld [vmem:[%s3069_s11 + $0xf2] ss:$2 sm:$0xff] }
  0x8f   : > { %1494 = vmatprep.mubr.f32.mxu0 %v2781_v7  ;;  %2499 = vmatprep.subr.bf16.mxu0 %v2498_v59 }
  0x90   : > { %783 = vmatmul.mubr.f32.vlgmr.msra.gmra.mrb[0].mxu1 %v1996_v62  ;;  %2530 = vmatprep.subr.bf16.mxu1 %v2498_v59  ;;  %v2197_v59 = vld [vmem:[%s3069_s11 + $0x62] ss:$2 sm:$0xff] }
  0x91   : > { %1495 = vmatmul.mubr.f32.vlgmr.msra.gmra.mrb[0].mxu0 %v2156_v0  ;;  %2538 = vmatpush1.bf16.msra.mxu1 %v2500_v63  ;;  %v2203_v62 = vld [vmem:[%s3069_s11 + $0x182] ss:$2 sm:$0xff] }
  0x92   : > { %2501 = vmatpush1.bf16.msra.mxu0 %v2500_v63  ;;  %788 = vmatprep.mubr.f32.mxu1 %v2781_v7  ;;  %v2199_v63 = vld [vmem:[%s3069_s11 + $0xc2] ss:$2 sm:$0xff]  ;;  %s161_s11 = sand.u32 1, %s2771_s13  }
  0x93   : > { %1500 = vmatprep.mubr.f32.mxu0 %v2781_v7  ;;  %2503 = vmatprep.subr.bf16.mxu0 %v2502_v3  ;;  %s1907_s17 = sshll.u32 %s161_s11, 7  ;;  %s3933_s29 = scalar_lea.sflag [#allocation3], %s161_s11 }
  0x94   : > { %789 = vmatmul.mubr.f32.gmra.mrb[2].mxu1 %v1997_v6  ;;  %2531 = vmatprep.subr.bf16.mxu1 %v2502_v3  ;;  %s3892_s19 = scalar_lea.vmem [#allocation2], %s1907_s17 }
  0x95   : > { %1501 = vmatmul.mubr.f32.gmra.mrb[2].mxu0 %v2157_v9  ;;  %2539 = vmatpush1.bf16.msra.mxu1 %v2504_v8  ;;  %s1795_s24 = sshll.u32 %s3892_s19, 4  ;;  %s3924_s24 = int_to_ptr.vmem [resolvable:$true] %s1795_s24 }
  0x96   : > { %2505 = vmatpush1.bf16.msra.mxu0 %v2504_v8  ;;  %794 = vmatprep.mubr.f32.mxu1 %v2781_v7  ;;  %s2717_s25 = scalar_lea.vmem %s3924_s24, 2048  ;;  %p2724_p0 = scmp.lt.s32.totalorder %s3924_s24, %s2722_s4 }
  0x97   : > { %1506 = vmatprep.mubr.f32.mxu0 %v2781_v7  ;;  %2507 = vmatprep.subr.bf16.mxu0 %v2506_v12  ;;  %p2718_p11 = scmp.ne.s32.totalorder %s3924_s24, %s2717_s25  ;;  %p2725_p1 = scmp.lt.s32.totalorder %s2723_s5, %s2717_s25 }
  0x98   : > { %795 = vmatmul.mubr.f32.gmra.mrb[4].mxu1 %v1998_v15  ;;  %2532 = vmatprep.subr.bf16.mxu1 %v2506_v12 }
  0x99   : > { %1507 = vmatmul.mubr.f32.gmra.mrb[4].mxu0 %v2158_v17  ;;  %2540 = vmatpush1.bf16.msra.mxu1 %v2508_v16  ;;  %p2719_p12 = pnand %p2718_p11, %p2843_p5  ;;  %p2726_p2 = por %p2725_p1, %p2724_p0 }
  0x9a   : > { %2509 = vmatpush1.bf16.msra.mxu0 %v2508_v16  ;;  %800 = vmatprep.mubr.f32.mxu1 %v2781_v7 }
  0x9b   : > { %1512 = vmatprep.mubr.f32.mxu0 %v2781_v7  ;;  %2511 = vmatprep.subr.bf16.mxu0 %v2510_v20  ;;  %p2720_p13 = pneg %p2719_p12 }
  0x9c   : > { %801 = vmatmul.mubr.f32.gmra.mrb[6].mxu1 %v1999_v23  ;;  %2533 = vmatprep.subr.bf16.mxu1 %v2510_v20 }
  0x9d   : > { %1513 = vmatmul.mubr.f32.gmra.mrb[6].mxu0 %v2159_v25  ;;  %2541 = vmatpush1.bf16.msra.mxu1 %v2512_v24  ;;  %p2727_p3 = pnand %p2726_p2, %p2720_p13 }
  0x9e   : > { %2513 = vmatpush1.bf16.msra.mxu0 %v2512_v24  ;;  %806 = vmatprep.mubr.f32.mxu1 %v2781_v7 }
  0x9f   : > { %1518 = vmatprep.mubr.f32.mxu0 %v2781_v7  ;;  %2515 = vmatprep.subr.bf16.mxu0 %v2514_v28 }
  0xa0   : > { %807 = vmatmul.mubr.f32.gmra.mrb[8].mxu1 %v2000_v31  ;;  %2534 = vmatprep.subr.bf16.mxu1 %v2514_v28  ;;  %v1741_v28 = vsub.s32 0, %v1740_v21  ;;  %v1745_v31 = vsub.s32 1, %v1740_v21 }
  0xa1   : > { %1519 = vmatmul.mubr.f32.gmra.mrb[8].mxu0 %v2160_v33  ;;  %2542 = vmatpush1.bf16.msra.mxu1 %v2516_v32 }
  0xa2   : > { %2517 = vmatpush1.bf16.msra.mxu0 %v2516_v32  ;;  %812 = vmatprep.mubr.f32.mxu1 %v2781_v7  ;;  %v1742_v37 = vrot.slane %v1737_v30, %v1741_v28 }
  0xa3   : > { %1524 = vmatprep.mubr.f32.mxu0 %v2781_v7  ;;  %2519 = vmatprep.subr.bf16.mxu0 %v2518_v36 }
  0xa4   : > { %813 = vmatmul.mubr.f32.gmra.mrb[10].mxu1 %v2001_v39  ;;  %2535 = vmatprep.subr.bf16.mxu1 %v2518_v36  ;;  %v3889_v39 = vrot.slane %v1737_v30, %v1745_v31 }
  0xa5   : > { %1525 = vmatmul.mubr.f32.gmra.mrb[10].mxu0 %v2161_v41  ;;  %2543 = vmatpush1.bf16.msra.mxu1 %v2520_v40 }
  0xa6   : > { %2521 = vmatpush1.bf16.msra.mxu0 %v2520_v40  ;;  %818 = vmatprep.mubr.f32.mxu1 %v2781_v7 }
  0xa7   : > { %1530 = vmatprep.mubr.f32.mxu0 %v2781_v7  ;;  %2523 = vmatprep.subr.bf16.mxu0 %v2522_v44 }
  0xa8   : > { %819 = vmatmul.mubr.f32.gmra.mrb[12].mxu1 %v2002_v47  ;;  %2536 = vmatprep.subr.bf16.mxu1 %v2522_v44 }
  0xa9   : > { %1531 = vmatmul.mubr.f32.gmra.mrb[12].mxu0 %v2162_v49  ;;  %2544 = vmatpush1.bf16.msra.mxu1 %v2524_v48 }
  0xaa   : > { %2525 = vmatpush1.bf16.msra.mxu0 %v2524_v48  ;;  %824 = vmatprep.mubr.f32.mxu1 %v2781_v7 }
  0xab   : > { %1536 = vmatprep.mubr.f32.mxu0 %v2781_v7  ;;  %2527 = vmatprep.subr.bf16.mxu0 %v2526_v52 }
  0xac   : > { %825 = vmatmul.mubr.f32.gmra.mrb[14].mxu1 %v2003_v53  ;;  %2537 = vmatprep.subr.bf16.mxu1 %v2526_v52 }
  0xad   : > { %1537 = vmatmul.mubr.f32.gmra.mrb[14].mxu0 %v2163_v55  ;;  %2545 = vmatpush1.bf16.msra.mxu1 %v2528_v54 }
  0xae   : > { %2529 = vmatpush1.bf16.msra.mxu0 %v2528_v54  ;;  %1672 = vmatprep.mubr.f32.mxu0 %v2781_v7 }
  0xaf   : > { %1696 = vmatprep.mubr.f32.mxu1 %v2781_v7 }
  0xb0   : > { %1697 = vmatmul.mubr.f32.vlgmr.msra.gmra.mrb[16].mxu1 %v2200_v56 }
  0xb1   : > { %1673 = vmatmul.mubr.f32.vlgmr.msra.gmra.mrb[0].mxu0 %v2196_v57  ;;  %1702 = vmatprep.mubr.f32.mxu1 %v2781_v7 }
  0xb2   : > { %1678 = vmatprep.mubr.f32.mxu0 %v2781_v7 }
  0xb4   : > { %1703 = vmatmul.mubr.f32.gmra.mrb[18].mxu1 %v2201_v58 }
  0xb5   : > { %1679 = vmatmul.mubr.f32.gmra.mrb[2].mxu0 %v2197_v59  ;;  %1708 = vmatprep.mubr.f32.mxu1 %v2781_v7 }
  0xb6   : > { %1684 = vmatprep.mubr.f32.mxu0 %v2781_v7 }
  0xb8   : > { %1709 = vmatmul.mubr.f32.gmra.mrb[20].mxu1 %v2202_v60 }
  0xb9   : > { %1685 = vmatmul.mubr.f32.gmra.mrb[4].mxu0 %v2198_v61  ;;  %1714 = vmatprep.mubr.f32.mxu1 %v2781_v7 }
  0xba   : > { %1690 = vmatprep.mubr.f32.mxu0 %v2781_v7 }
  0xbc   : > { %1715 = vmatmul.mubr.f32.gmra.mrb[22].mxu1 %v2203_v62 }
  0xbd   : > { %1691 = vmatmul.mubr.f32.gmra.mrb[6].mxu0 %v2199_v63 }
 0x163   : > { %v784_v0 = vpop.f32.mrb[0].mxu1 }
 0x164   : > { %v786_v1 = vpop.f32.mrb[1].mxu1 }
 0x167   : > { %v790_v2 = vpop.f32.mrb[2].mxu1 }
 0x168   : > { %v3873_v3 = vpop.f32.mrb[3].mxu1 }
 0x16b   : > { %v3875_v4 = vpop.f32.mrb[4].mxu1 }
 0x16c   : > { %v3877_v5 = vpop.f32.mrb[5].mxu1 }
 0x16f   : > { %v3879_v6 = vpop.f32.mrb[6].mxu1 }
 0x170   : > { %v3881_v8 = vpop.f32.mrb[7].mxu1 }
 0x173   : > { %v808_v9 = vpop.f32.mrb[8].mxu1 }
 0x174   : > { %v1520_v10 = vpop.f32.mrb[8].mxu0  ;;  %v810_v11 = vpop.f32.mrb[9].mxu1 }
 0x175   : > { %v2554_v7 = vadd.f32 %v1520_v10, %v808_v9  ;;  %v1522_v12 = vpop.f32.mrb[9].mxu0 }
 0x176   : > { %v2556_v13 = vadd.f32 %v1522_v12, %v810_v11 }
 0x177   : > { %v814_v15 = vpop.f32.mrb[10].mxu1 }
 0x178   : > { %v1526_v16 = vpop.f32.mrb[10].mxu0  ;;  %v816_v17 = vpop.f32.mrb[11].mxu1 }
 0x179   : > { %v2558_v18 = vadd.f32 %v1526_v16, %v814_v15  ;;  %v1528_v19 = vpop.f32.mrb[11].mxu0 }
 0x17a   : > { %v2560_v20 = vadd.f32 %v1528_v19, %v816_v17 }
 0x17b   : > { %v820_v22 = vpop.f32.mrb[12].mxu1 }
 0x17c   : > { %v1532_v23 = vpop.f32.mrb[12].mxu0  ;;  %v822_v24 = vpop.f32.mrb[13].mxu1 }
 0x17d   : > { %v2562_v25 = vadd.f32 %v1532_v23, %v820_v22  ;;  %v1534_v26 = vpop.f32.mrb[13].mxu0 }
 0x17e   : > { %v2564_v27 = vadd.f32 %v1534_v26, %v822_v24 }
 0x17f   : > { %v826_v29 = vpop.f32.mrb[14].mxu1 }
 0x180   : > { %v1538_v32 = vpop.f32.mrb[14].mxu0  ;;  %v828_v33 = vpop.f32.mrb[15].mxu1 }
 0x181   : > { %v2566_v34 = vadd.f32 %v1538_v32, %v826_v29  ;;  %v1540_v35 = vpop.f32.mrb[15].mxu0 }
 0x182   : > { %v2568_v36 = vadd.f32 %v1540_v35, %v828_v33 }
 0x183   : > { %v1698_v38 = vpop.f32.mrb[16].mxu1 }
 0x184   : > { %v1674_v40 = vpop.f32.mrb[0].mxu0  ;;  %v2555_v41 = vadd.f32 %v2554_v7, %v1698_v38  ;;  %v1700_v42 = vpop.f32.mrb[17].mxu1 }
 0x185   : > { %v2546_v43 = vadd.f32 %v1674_v40, %v784_v0  ;;  %v1676_v44 = vpop.f32.mrb[1].mxu0  ;;  %v2557_v45 = vadd.f32 %v2556_v13, %v1700_v42 }
 0x186   : > { %v1757_v46 = vadd.f32 %v2555_v41, %v1742_v37  ;;  %v2547_v47 = vadd.f32 %v1676_v44, %v786_v1 }
 0x187   : > { %v1749_v48 = vadd.f32 %v2546_v43, %v1742_v37  ;;  %v1758_v49 = vadd.f32 %v2557_v45, %v3889_v39  ;;  %v1704_v50 = vpop.f32.mrb[18].mxu1 }
 0x188   : > { %1773 = vst [vmem:[%s3892_s19 + $0x40] sm:$0xff] %v1757_v46  ;;  %v1750_v51 = vadd.f32 %v2547_v47, %v3889_v39  ;;  %v1680_v52 = vpop.f32.mrb[2].mxu0  ;;  %v2559_v53 = vadd.f32 %v2558_v18, %v1704_v50  ;;  %v1706_v54 = vpop.f32.mrb[19].mxu1 }
 0x189   : > { %1765 = vst [vmem:[%s3892_s19] sm:$0xff] %v1749_v48  ;;  %1774 = vst [vmem:[%s3892_s19 + $0x48] sm:$0xff] %v1758_v49  ;;  %v2548_v55 = vadd.f32 %v1680_v52, %v790_v2  ;;  %v1682_v56 = vpop.f32.mrb[3].mxu0  ;;  %v2561_v57 = vadd.f32 %v2560_v20, %v1706_v54 }
 0x18a   : > { %1766 = vst [vmem:[%s3892_s19 + $0x8] sm:$0xff] %v1750_v51  ;;  %v1759_v58 = vadd.f32 %v2559_v53, %v1742_v37  ;;  %v2549_v59 = vadd.f32 %v1682_v56, %v3873_v3 }
 0x18b   : > { %v1751_v60 = vadd.f32 %v2548_v55, %v1742_v37  ;;  %v1760_v61 = vadd.f32 %v2561_v57, %v3889_v39  ;;  %v1710_v62 = vpop.f32.mrb[20].mxu1 }
 0x18c   : > { %1775 = vst [vmem:[%s3892_s19 + $0x50] sm:$0xff] %v1759_v58  ;;  %v1752_v63 = vadd.f32 %v2549_v59, %v3889_v39  ;;  %v1686_v0 = vpop.f32.mrb[4].mxu0  ;;  %v2563_v1 = vadd.f32 %v2562_v25, %v1710_v62  ;;  %v1712_v9 = vpop.f32.mrb[21].mxu1 }
 0x18d   : > { %1767 = vst [vmem:[%s3892_s19 + $0x10] sm:$0xff] %v1751_v60  ;;  %1776 = vst [vmem:[%s3892_s19 + $0x58] sm:$0xff] %v1760_v61  ;;  %v2550_v2 = vadd.f32 %v1686_v0, %v3875_v4  ;;  %v1688_v10 = vpop.f32.mrb[5].mxu0  ;;  %v2565_v3 = vadd.f32 %v2564_v27, %v1712_v9 }
 0x18e   : > { %1768 = vst [vmem:[%s3892_s19 + $0x18] sm:$0xff] %v1752_v63  ;;  %v1761_v11 = vadd.f32 %v2563_v1, %v1742_v37  ;;  %v2551_v7 = vadd.f32 %v1688_v10, %v3877_v5 }
 0x18f   : > { %v1753_v12 = vadd.f32 %v2550_v2, %v1742_v37  ;;  %v1762_v13 = vadd.f32 %v2565_v3, %v3889_v39  ;;  %v1716_v14 = vpop.f32.mrb[22].mxu1 }
 0x190   : > { %1777 = vst [vmem:[%s3892_s19 + $0x60] sm:$0xff] %v1761_v11  ;;  %v1754_v15 = vadd.f32 %v2551_v7, %v3889_v39  ;;  %v1692_v16 = vpop.f32.mrb[6].mxu0  ;;  %v2567_v17 = vadd.f32 %v2566_v34, %v1716_v14  ;;  %v1718_v4 = vpop.f32.mrb[23].mxu1 }
 0x191   : > { %1769 = vst [vmem:[%s3892_s19 + $0x20] sm:$0xff] %v1753_v12  ;;  %1778 = vst [vmem:[%s3892_s19 + $0x68] sm:$0xff] %v1762_v13  ;;  %v2552_v5 = vadd.f32 %v1692_v16, %v3879_v6  ;;  %v1694_v18 = vpop.f32.mrb[7].mxu0  ;;  %v2569_v19 = vadd.f32 %v2568_v36, %v1718_v4 }
 0x192   : > { %1770 = vst [vmem:[%s3892_s19 + $0x28] sm:$0xff] %v1754_v15  ;;  %v1763_v20 = vadd.f32 %v2567_v17, %v1742_v37  ;;  %v2553_v21 = vadd.f32 %v1694_v18, %v3881_v8 }
 0x193   : > { %v1755_v22 = vadd.f32 %v2552_v5, %v1742_v37  ;;  %v1764_v23 = vadd.f32 %v2569_v19, %v3889_v39 }
 0x194   : > { %1779 = vst [vmem:[%s3892_s19 + $0x70] sm:$0xff] %v1763_v20  ;;  %v1756_v6 = vadd.f32 %v2553_v21, %v3889_v39 }
 0x195   : > { %1771 = vst [vmem:[%s3892_s19 + $0x30] sm:$0xff] %v1755_v22  ;;  %1780 = vst [vmem:[%s3892_s19 + $0x78] sm:$0xff] %v1764_v23 }
 0x196   : > { %1772 = vst [vmem:[%s3892_s19 + $0x38] sm:$0xff] %v1756_v6 }
 0x197   : > { %2730 = shalt.err (!%p2727_p3)
}
 0x198   : > { %s2731_s6 = scalar_lea.hbm %s3922_s28, 2048  ;;  %s2735_s26 = scalar_lea.hbm %s3977_s3, 4096 }
 0x199   : > { %p2732_p4 = scmp.ne.s32.totalorder %s3922_s28, %s2731_s6  ;;  %p2736_p9 = scmp.lt.u32.totalorder %s3922_s28, %s3977_s3 }
 0x19a   : > { %p2737_p10 = scmp.lt.u32.totalorder %s2735_s26, %s2731_s6  ;;  %p2739_p12 = scmp.lt.u32.totalorder %s2731_s6, %s3922_s28 }
 0x19b   : > { %p2733_p7 = pnand %p2732_p4, %p2843_p5 }
 0x19c   : > { %p2738_p11 = por %p2737_p10, %p2736_p9 }
 0x19d   : > { %p2734_p8 = pneg %p2733_p7 }
 0x19e   : > { %p2740_p13 = por %p2739_p12, %p2738_p11 }
 0x1a0   : > { %p2741_p0 = pnand %p2740_p13, %p2734_p8 }
 0x1a2   : > { %2744 = shalt.err (!%p2741_p0)
}
 0x1a3   : > { %s2783_s10 = smov 256   ;;  %s2784_s17 = smov 16  }
 0x1a4   : > { %2675 = dma.vmem_to_hbm [thread:$0]  (%p2843_p5), %s3924_s24, 2048, %s3922_s28, %s3933_s29, %s2783_s10, %s2783_s10, %s2784_s17  }
 0x1a5 PF: > { %p2681_p1 = scmp.ge.s32.totalorder %s2779_s15, 2  ;;  %s1810_s19 = sand.u32 1, %s2767_s12  }
 0x1a6   : > { %s1811_s20 = scalar_lea.sflag [#allocation3], %s1810_s19 }
 0x1a7   : > { %p2678_p2 = pnand %p2681_p1, %p2847_p6 }
 0x1a9   : > { %2762 = dma.done.wait (!%p2678_p2), %s1811_s20, 2048  }
 0x1aa   : > { %2764 = vsyncadd (!%p2678_p2), %s1811_s20, 4294965248  ;;  %p13_p3 = scmp.ge.s32.totalorder %s2830_s18, 4   ;;  %s3980_s12 = smov %s2771_s13 }
 0x1ab   : > { %s3981_s13 = smov %s2775_s14  ;;  %s3982_s14 = smov %s2841_s21 }
 0x1ac   : > { %s3983_s15 = smov %s2830_s18  ;;  %15 = sbr.rel (!%p13_p3) target bundleno = 3 (0x3), region = 146 }
 0x1b3   :  { %1816 = vsyncpa [#allocation3], 1 }
 0x1b4   :  { %1818 = vsyncpa [#allocation3 + $0x1], 1 }

</bundles_post_ra>
